<compile_context>
chip_gen: v6e
topology: v6e:2x2x1
jax: 0.10.0
libtpu: 0.0.40
codegen_flags: <defaults>
</compile_context>

<pallas_src>
import functools

import jax
import jax.numpy as jnp
from jax.experimental import pallas as pl
from jax.experimental.pallas import tpu as pltpu


def _vq_kernel(z_ref, e_ref, et_ref, esq_ref, q_ref, sse_ref, *, hw, hw_pad):
    """One (D, TS) tile of spatial columns against the full codebook.

    z_ref  : (1, D, TS)  latent columns (channels-first)
    e_ref  : (K, D)      codebook (resident)
    et_ref : (D, K)      codebook transposed (resident)
    esq_ref: (K, 1)      precomputed ||e_k||^2
    q_ref  : (1, D, TS)  quantized columns
    sse_ref: (1, 1, 8, 128) per-tile partial sum of squared errors
    """
    j = pl.program_id(1)
    D, TS = z_ref.shape[1], z_ref.shape[2]
    K = e_ref.shape[0]

    z = z_ref[0].astype(jnp.float32)            # (D, TS)
    e = e_ref[...]                              # (K, D)
    e_t = et_ref[...]                           # (D, K)
    e_sq = esq_ref[...]                         # (K, 1)

    # Squared distance up to a per-column constant ||z||^2 (irrelevant for the
    # argmin):  dist[k, s] = ||e_k||^2 - 2 <e_k, z_s>
    cross = jnp.dot(e, z, preferred_element_type=jnp.float32)     # (K, TS) MXU
    dist = e_sq - 2.0 * cross                                     # (K, TS)

    # First-minimum index over the codebook (sublane) axis, matching
    # torch.argmin tie-breaking, using only min-reductions + compares.
    dmin = jnp.min(dist, axis=0, keepdims=True)                   # (1, TS)
    iota_k = jax.lax.broadcasted_iota(jnp.int32, (K, TS), 0)      # (K, TS)
    cand = jnp.where(dist == dmin, iota_k, K)                     # (K, TS)
    idx = jnp.min(cand, axis=0, keepdims=True)                    # (1, TS)
    one_hot = (iota_k == idx).astype(jnp.float32)                 # (K, TS)

    # Quantized columns: q = e^T @ one_hot  (exact row gather via MXU).
    q = jnp.dot(e_t, one_hot, preferred_element_type=jnp.float32)  # (D, TS)
    q_ref[0] = q.astype(q_ref.dtype)

    # Partial SSE for the losses; mask out padded spatial columns (only when
    # padding exists -- compile-time branch, hw / hw_pad are static).
    diff = z - q
    d2 = diff * diff
    if hw_pad != hw:
        col = jax.lax.broadcasted_iota(jnp.int32, (D, TS), 1) + j * TS
        d2 = jnp.where(col < hw, d2, 0.0)

    # Fold (D, TS) -> (8, 128) with tile-aligned static slices: pure vreg adds
    # (no cross-lane reduction, no masked store), reduced further in JAX.
    part = d2[:, 0:128]
    for g in range(1, TS // 128):
        part = part + d2[:, g * 128:(g + 1) * 128]
    part8 = part[0:8, :]
    for g in range(1, D // 8):
        part8 = part8 + part[g * 8:(g + 1) * 8, :]
    sse_ref[0, 0] = part8


def _vq_pallas(z3, e, e_t, e_sq, *, hw, tile_s):
    """z3: (b, D, hw_pad) f32; e: (K, D); e_t: (D, K); e_sq: (K, 1)."""
    b, D, hw_pad = z3.shape
    K = e.shape[0]
    n_tiles = hw_pad // tile_s
    grid = (b, n_tiles)

    kernel = functools.partial(_vq_kernel, hw=hw, hw_pad=hw_pad)

    return pl.pallas_call(
        kernel,
        out_shape=(
            jax.ShapeDtypeStruct((b, D, hw_pad), z3.dtype),
            jax.ShapeDtypeStruct((b, n_tiles, 8, 128), jnp.float32),
        ),
        grid_spec=pltpu.PrefetchScalarGridSpec(
            num_scalar_prefetch=0,
            grid=grid,
            in_specs=[
                pl.BlockSpec((1, D, tile_s), lambda bi, j: (bi, 0, j)),  # z cols
                pl.BlockSpec((K, D), lambda bi, j: (0, 0)),              # codebook
                pl.BlockSpec((D, K), lambda bi, j: (0, 0)),              # codebook^T
                pl.BlockSpec((K, 1), lambda bi, j: (0, 0)),              # ||e||^2
            ],
            out_specs=[
                pl.BlockSpec((1, D, tile_s), lambda bi, j: (bi, 0, j)),  # quantized
                pl.BlockSpec((1, 1, 8, 128), lambda bi, j: (bi, j, 0, 0)),  # SSE part
            ],
        ),
        compiler_params=pltpu.CompilerParams(
            # No cross-step carries anywhere -> fully parallel grid
            # (enables megacore sharding on v7x; harmless on v5e/v6e).
            dimension_semantics=("parallel", "parallel"),
        ),
    )(z3, e, e_t, e_sq)


@functools.partial(jax.jit, static_argnames=("beta", "tile_s"))
def quantizer_forward(z, codebook, *, beta=0.2, tile_s=256):
    """Forward pass of the VQ-VAE Quantizer.

    z:        (b, d, h, w)  NCHW, like the PyTorch module
    codebook: (K, d)
    returns (quantized (b, d, h, w), codebook_loss, commitment_loss)
    """
    b, d, h, w = z.shape
    K, D = codebook.shape
    assert d == D, "latent dim mismatch"
    assert D % 8 == 0 and tile_s % 128 == 0

    hw = h * w
    hw_pad = ((hw + tile_s - 1) // tile_s) * tile_s

    # Free reshape to channels-first (b, D, H*W); pad spatial if needed.
    z3 = z.reshape(b, d, hw).astype(jnp.float32)
    if hw_pad != hw:
        z3 = jnp.pad(z3, ((0, 0), (0, 0), (0, hw_pad - hw)))

    # Hoisted codebook constants (tiny, one-time).
    e = codebook.astype(jnp.float32)                      # (K, D)
    e_t = jnp.transpose(e)                                # (D, K)
    e_sq = jnp.sum(e * e, axis=1, keepdims=True)          # (K, 1)

    q3, sse_parts = _vq_pallas(z3, e, e_t, e_sq, hw=hw, tile_s=tile_s)

    sse = jnp.sum(sse_parts)
    mse = sse / jnp.float32(b * hw * d)
    codebook_loss = mse                  # F.mse_loss(z.detach(), quantized)
    commitment_loss = beta * mse         # beta * F.mse_loss(z, quantized.detach())

    # Forward value of the straight-through estimator is just `quantized`.
    # TODO(synk): backward semantics (STE gradient pass-through + detach on the
    # two MSE terms) would need a jax.custom_vjp wrapper; forward-only here.
    quantized = q3[:, :, :hw].reshape(b, d, h, w).astype(z.dtype)
    return quantized, codebook_loss, commitment_loss


def _reference_forward(z, codebook, beta=0.2):
    """Pure-JAX reference matching the PyTorch module."""
    b, d, h, w = z.shape
    zf = jnp.transpose(z, (0, 2, 3, 1)).reshape(b * h * w, d)
    dist = (
        jnp.sum(zf**2, axis=1, keepdims=True)
        + jnp.sum(codebook**2, axis=1)
        - 2.0 * zf @ codebook.T
    )
    idx = jnp.argmin(dist, axis=1)
    q = codebook[idx]
    mse = jnp.mean((zf - q) ** 2)
    quantized = jnp.transpose(q.reshape(b, h, w, d), (0, 3, 1, 2))
    return quantized, mse, beta * mse


if __name__ == "__main__":
    # Module defaults: codebook_dim (K) = 256, latent_dim (D) = 128, beta = 0.2
    K, D, beta = 256, 128, 0.2

    def run_case(b, h, w, tile_s):
        key = jax.random.PRNGKey(0)
        kz, ke = jax.random.split(key)
        z = jax.random.normal(kz, (b, D, h, w), dtype=jnp.float32)
        # nn.Embedding weight uniform_(-1/K, 1/K), deterministic synthetic init
        codebook = jax.random.uniform(
            ke, (K, D), dtype=jnp.float32, minval=-1.0 / K, maxval=1.0 / K
        )

        out = quantizer_forward(z, codebook, beta=beta, tile_s=tile_s)
        jax.block_until_ready(out)
        quantized, cb_loss, commit_loss = out

        q_ref, cb_ref, com_ref = _reference_forward(z, codebook, beta)
        assert quantized.shape == (b, D, h, w)
        assert jnp.allclose(quantized, q_ref, atol=1e-5, rtol=1e-5)
        assert jnp.allclose(cb_loss, cb_ref, atol=1e-5, rtol=1e-4)
        assert jnp.allclose(commit_loss, com_ref, atol=1e-5, rtol=1e-4)

    run_case(2, 16, 16, 256)   # H*W = 256: exact multiple of the lane tile
    run_case(2, 9, 9, 128)     # H*W = 81: exercises spatial padding + masking
    print("KERNEL_OK")
</pallas_src>

<mosaic_0001>
module attributes {stable_mosaic.version = 11 : i64} {
  func.func @_vq_kernel(%arg0: i32, %arg1: i32, %arg2: memref<1x128x256xf32, #tpu.memory_space<vmem>>, %arg3: memref<256x128xf32, #tpu.memory_space<vmem>>, %arg4: memref<128x256xf32, #tpu.memory_space<vmem>>, %arg5: memref<256x1xf32, #tpu.memory_space<vmem>>, %arg6: memref<1x128x256xf32, #tpu.memory_space<vmem>>, %arg7: memref<1x1x8x128xf32, #tpu.memory_space<vmem>>) attributes {dimension_semantics = [#tpu.dimension_semantics<parallel>, #tpu.dimension_semantics<parallel>], iteration_bounds = array<i64: 2, 1>, scalar_prefetch = 0 : i64, scratch_operands = 0 : i64, tpu.core_type = #tpu.core_type<tc>, window_params = [{transform_indices = @transform_0, window_bounds = array<i64: 1, 128, 256>}, {pipeline_mode = #tpu.pipeline_mode<synchronous>, transform_indices = @transform_1, window_bounds = array<i64: 256, 128>}, {pipeline_mode = #tpu.pipeline_mode<synchronous>, transform_indices = @transform_2, window_bounds = array<i64: 128, 256>}, {pipeline_mode = #tpu.pipeline_mode<synchronous>, transform_indices = @transform_3, window_bounds = array<i64: 256, 1>}, {transform_indices = @transform_4, window_bounds = array<i64: 1, 128, 256>}, {transform_indices = @transform_5, window_bounds = array<i64: 1, 1, 8, 128>}]} {
    %c0 = arith.constant 0 : index
    %c0_0 = arith.constant 0 : index
    %c0_1 = arith.constant 0 : index
    %0 = vector.load %arg2[%c0, %c0_0, %c0_1] : memref<1x128x256xf32, #tpu.memory_space<vmem>>, vector<1x128x256xf32>
    %1 = vector.shape_cast %0 : vector<1x128x256xf32> to vector<128x256xf32>
    %c0_2 = arith.constant 0 : index
    %c0_3 = arith.constant 0 : index
    %2 = vector.load %arg3[%c0_2, %c0_3] : memref<256x128xf32, #tpu.memory_space<vmem>>, vector<256x128xf32>
    %c0_4 = arith.constant 0 : index
    %c0_5 = arith.constant 0 : index
    %3 = vector.load %arg4[%c0_4, %c0_5] : memref<128x256xf32, #tpu.memory_space<vmem>>, vector<128x256xf32>
    %c0_6 = arith.constant 0 : index
    %c0_7 = arith.constant 0 : index
    %4 = vector.load %arg5[%c0_6, %c0_7] : memref<256x1xf32, #tpu.memory_space<vmem>>, vector<256x1xf32>
    %cst = arith.constant dense<0.000000e+00> : vector<256x256xf32>
    %5 = tpu.matmul %2, %1, %cst {dimension_numbers = #tpu.dot_dimension_numbers<[1], [0], [0], [1], [0, 0, 1, 1], [], []>} : vector<256x128xf32>, vector<128x256xf32>, vector<256x256xf32> -> vector<256x256xf32>
    %cst_8 = arith.constant 2.000000e+00 : f32
    %6 = vector.broadcast %cst_8 : f32 to vector<256x256xf32>
    %7 = arith.mulf %6, %5 : vector<256x256xf32>
    %8 = vector.broadcast %4 : vector<256x1xf32> to vector<256x256xf32>
    %9 = arith.subf %8, %7 : vector<256x256xf32>
    %cst_9 = arith.constant dense<0x7F800000> : vector<256xf32>
    %10 = vector.multi_reduction <minimumf>, %9, %cst_9 [0] : vector<256x256xf32> to vector<256xf32>
    %11 = vector.shape_cast %10 : vector<256xf32> to vector<1x256xf32>
    %12 = tpu.iota {dimensions = array<i32: 0>} : vector<256x256xi32>
    %13 = vector.broadcast %11 : vector<1x256xf32> to vector<256x256xf32>
    %14 = arith.cmpf oeq, %9, %13 : vector<256x256xf32>
    %c256_i32 = arith.constant 256 : i32
    %15 = vector.broadcast %c256_i32 : i32 to vector<256x256xi32>
    %16 = arith.select %14, %12, %15 : vector<256x256xi1>, vector<256x256xi32>
    %cst_10 = arith.constant dense<2147483647> : vector<256xi32>
    %17 = vector.multi_reduction <minsi>, %16, %cst_10 [0] : vector<256x256xi32> to vector<256xi32>
    %18 = vector.shape_cast %17 : vector<256xi32> to vector<1x256xi32>
    %19 = vector.broadcast %18 : vector<1x256xi32> to vector<256x256xi32>
    %20 = arith.cmpi eq, %12, %19 : vector<256x256xi32>
    %21 = arith.extui %20 : vector<256x256xi1> to vector<256x256xi32>
    %22 = arith.sitofp %21 : vector<256x256xi32> to vector<256x256xf32>
    %cst_11 = arith.constant dense<0.000000e+00> : vector<128x256xf32>
    %23 = tpu.matmul %3, %22, %cst_11 {dimension_numbers = #tpu.dot_dimension_numbers<[1], [0], [0], [1], [0, 0, 1, 1], [], []>} : vector<128x256xf32>, vector<256x256xf32>, vector<128x256xf32> -> vector<128x256xf32>
    %c0_12 = arith.constant 0 : index
    %c0_13 = arith.constant 0 : index
    %c0_14 = arith.constant 0 : index
    %24 = vector.load %arg6[%c0_12, %c0_13, %c0_14] : memref<1x128x256xf32, #tpu.memory_space<vmem>>, vector<1x128x256xf32>
    %25 = vector.shape_cast %24 : vector<1x128x256xf32> to vector<128x256xf32>
    %26 = vector.shape_cast %23 : vector<128x256xf32> to vector<1x128x256xf32>
    tpu.vector_store %arg6[%c0_12, %c0_13, %c0_14], %26 {strides = array<i32>} : memref<1x128x256xf32, #tpu.memory_space<vmem>>, vector<1x128x256xf32>,
    %27 = arith.subf %1, %23 : vector<128x256xf32>
    %28 = arith.mulf %27, %27 : vector<128x256xf32>
    %29 = vector.extract_strided_slice %28 {offsets = [0, 0], sizes = [128, 128], strides = [1, 1]} : vector<128x256xf32> to vector<128x128xf32>
    %30 = vector.extract_strided_slice %28 {offsets = [0, 128], sizes = [128, 128], strides = [1, 1]} : vector<128x256xf32> to vector<128x128xf32>
    %31 = arith.addf %29, %30 : vector<128x128xf32>
    %32 = vector.extract_strided_slice %31 {offsets = [0, 0], sizes = [8, 128], strides = [1, 1]} : vector<128x128xf32> to vector<8x128xf32>
    %33 = vector.extract_strided_slice %31 {offsets = [8, 0], sizes = [8, 128], strides = [1, 1]} : vector<128x128xf32> to vector<8x128xf32>
    %34 = arith.addf %32, %33 : vector<8x128xf32>
    %35 = vector.extract_strided_slice %31 {offsets = [16, 0], sizes = [8, 128], strides = [1, 1]} : vector<128x128xf32> to vector<8x128xf32>
    %36 = arith.addf %34, %35 : vector<8x128xf32>
    %37 = vector.extract_strided_slice %31 {offsets = [24, 0], sizes = [8, 128], strides = [1, 1]} : vector<128x128xf32> to vector<8x128xf32>
    %38 = arith.addf %36, %37 : vector<8x128xf32>
    %39 = vector.extract_strided_slice %31 {offsets = [32, 0], sizes = [8, 128], strides = [1, 1]} : vector<128x128xf32> to vector<8x128xf32>
    %40 = arith.addf %38, %39 : vector<8x128xf32>
    %41 = vector.extract_strided_slice %31 {offsets = [40, 0], sizes = [8, 128], strides = [1, 1]} : vector<128x128xf32> to vector<8x128xf32>
    %42 = arith.addf %40, %41 : vector<8x128xf32>
    %43 = vector.extract_strided_slice %31 {offsets = [48, 0], sizes = [8, 128], strides = [1, 1]} : vector<128x128xf32> to vector<8x128xf32>
    %44 = arith.addf %42, %43 : vector<8x128xf32>
    %45 = vector.extract_strided_slice %31 {offsets = [56, 0], sizes = [8, 128], strides = [1, 1]} : vector<128x128xf32> to vector<8x128xf32>
    %46 = arith.addf %44, %45 : vector<8x128xf32>
    %47 = vector.extract_strided_slice %31 {offsets = [64, 0], sizes = [8, 128], strides = [1, 1]} : vector<128x128xf32> to vector<8x128xf32>
    %48 = arith.addf %46, %47 : vector<8x128xf32>
    %49 = vector.extract_strided_slice %31 {offsets = [72, 0], sizes = [8, 128], strides = [1, 1]} : vector<128x128xf32> to vector<8x128xf32>
    %50 = arith.addf %48, %49 : vector<8x128xf32>
    %51 = vector.extract_strided_slice %31 {offsets = [80, 0], sizes = [8, 128], strides = [1, 1]} : vector<128x128xf32> to vector<8x128xf32>
    %52 = arith.addf %50, %51 : vector<8x128xf32>
    %53 = vector.extract_strided_slice %31 {offsets = [88, 0], sizes = [8, 128], strides = [1, 1]} : vector<128x128xf32> to vector<8x128xf32>
    %54 = arith.addf %52, %53 : vector<8x128xf32>
    %55 = vector.extract_strided_slice %31 {offsets = [96, 0], sizes = [8, 128], strides = [1, 1]} : vector<128x128xf32> to vector<8x128xf32>
    %56 = arith.addf %54, %55 : vector<8x128xf32>
    %57 = vector.extract_strided_slice %31 {offsets = [104, 0], sizes = [8, 128], strides = [1, 1]} : vector<128x128xf32> to vector<8x128xf32>
    %58 = arith.addf %56, %57 : vector<8x128xf32>
    %59 = vector.extract_strided_slice %31 {offsets = [112, 0], sizes = [8, 128], strides = [1, 1]} : vector<128x128xf32> to vector<8x128xf32>
    %60 = arith.addf %58, %59 : vector<8x128xf32>
    %61 = vector.extract_strided_slice %31 {offsets = [120, 0], sizes = [8, 128], strides = [1, 1]} : vector<128x128xf32> to vector<8x128xf32>
    %62 = arith.addf %60, %61 : vector<8x128xf32>
    %c0_15 = arith.constant 0 : index
    %c0_16 = arith.constant 0 : index
    %c0_17 = arith.constant 0 : index
    %c0_18 = arith.constant 0 : index
    %63 = vector.load %arg7[%c0_15, %c0_16, %c0_17, %c0_18] : memref<1x1x8x128xf32, #tpu.memory_space<vmem>>, vector<1x1x8x128xf32>
    %64 = vector.shape_cast %63 : vector<1x1x8x128xf32> to vector<8x128xf32>
    %65 = vector.shape_cast %62 : vector<8x128xf32> to vector<1x1x8x128xf32>
    tpu.vector_store %arg7[%c0_15, %c0_16, %c0_17, %c0_18], %65 {strides = array<i32>} : memref<1x1x8x128xf32, #tpu.memory_space<vmem>>, vector<1x1x8x128xf32>,
    return
  }
  func.func @transform_0(%arg0: i32, %arg1: i32) -> (i32, i32, i32) {
    %c0_i32 = arith.constant 0 : i32
    %c0_i32_0 = arith.constant 0 : i32
    return %arg0, %c0_i32, %arg1 : i32, i32, i32
  }
  func.func @transform_1(%arg0: i32, %arg1: i32) -> (i32, i32) {
    %c0_i32 = arith.constant 0 : i32
    %c0_i32_0 = arith.constant 0 : i32
    %c0_i32_1 = arith.constant 0 : i32
    return %c0_i32, %c0_i32_0 : i32, i32
  }
  func.func @transform_2(%arg0: i32, %arg1: i32) -> (i32, i32) {
    %c0_i32 = arith.constant 0 : i32
    %c0_i32_0 = arith.constant 0 : i32
    %c0_i32_1 = arith.constant 0 : i32
    return %c0_i32, %c0_i32_0 : i32, i32
  }
  func.func @transform_3(%arg0: i32, %arg1: i32) -> (i32, i32) {
    %c0_i32 = arith.constant 0 : i32
    %c0_i32_0 = arith.constant 0 : i32
    %c0_i32_1 = arith.constant 0 : i32
    return %c0_i32, %c0_i32_0 : i32, i32
  }
  func.func @transform_4(%arg0: i32, %arg1: i32) -> (i32, i32, i32) {
    %c0_i32 = arith.constant 0 : i32
    %c0_i32_0 = arith.constant 0 : i32
    return %arg0, %c0_i32, %arg1 : i32, i32, i32
  }
  func.func @transform_5(%arg0: i32, %arg1: i32) -> (i32, i32, i32, i32) {
    %c0_i32 = arith.constant 0 : i32
    %c0_i32_0 = arith.constant 0 : i32
    %c0_i32_1 = arith.constant 0 : i32
    return %arg0, %arg1, %c0_i32, %c0_i32_0 : i32, i32, i32, i32
  }
}

</mosaic_0001>

<bundles_post_ra>
// kernel: quantizer_forward.1
= control target key start
LH: loop header
LB: loop body
LE: loop exit
PB: predicated region body
PF: predicated region fallthrough
CT: control target
= control target key end

     0   :  { %s2202_s18 = smov 0   ;;  %s2204_s19 = smov 0   ;;  %s3563_s0 = inlined_call_operand.vmem [shape: f32[2,128,256], index: 0, kind: input, shape index: {}]   ;;  %s3564_s1 = inlined_call_operand.vmem [shape: f32[256,128], index: 1, kind: input, shape index: {}]   ;;  %s3565_s2 = inlined_call_operand.vmem [shape: f32[128,256], index: 2, kind: input, shape index: {}]   ;;  %s3566_s3 = inlined_call_operand.vmem [shape: f32[256,1], index: 3, kind: input, shape index: {}]   ;;  %s3567_s4 = inlined_call_operand.vmem [shape: f32[2,128,256], index: 4, kind: output, shape index: {0}]   ;;  %s3568_s5 = inlined_call_operand.vmem [shape: f32[2,1,8,128], index: 5, kind: output, shape index: {1}]  }
   0x1   :  { %s2206_s20 = smov 0  }
   0x2 LB: > { %s28_s21 = sadd.s32 1, %s2163_s19  ;;  %p1946_p0 = scmp.ge.s32.totalorder %s2167_s20, 1  ;;  %s2167_s20 = sphi %s2206_s20, %s16_s20   ;;  %s2163_s19 = sphi %s2204_s19, %s3759_s19   ;;  %s2159_s18 = sphi %s2202_s18, %s3758_s18  }
   0x3   : > { %p30_p1 = scmp.ge.s32.totalorder %s28_s21, 2  ;;  %p213_p2 = scmp.lt.s32.totalorder %s2167_s20, 3 }
   0x5   : > { %s3761_s21 = smov (%p30_p1, %s28_s21), 0  ;;  %p214_p3 = pnand %p1946_p0, %p213_p2 }
   0x7   : > { %217 = sbr.rel (%p214_p3) target bundleno = 798 (0x31e), region = 36 }
   0xc   : > { %p257_p4 = scmp.lt.s32.totalorder %s2159_s18, 1  ;;  %v2169_v0 = vmov 0.0   ;;  %v2170_v1 = vmov 0   ;;  %v379_v15 = vld [vmem:[%s3566_s3] sm:$0xff]  ;;  %v380_v18 = vld [vmem:[%s3566_s3 + $0x8] sm:$0xff]  ;;  %v381_v19 = vld [vmem:[%s3566_s3 + $0x10] sm:$0xff] }
   0xd   : > { %475 = vmatprep.mubr.f32.mxu0 %v2169_v0  ;;  %2111 = vset.pattern.permute.xlu0 %v2170_v1  ;;  %v382_v22 = vld [vmem:[%s3566_s3 + $0x18] sm:$0xff]  ;;  %v383_v25 = vld [vmem:[%s3566_s3 + $0x20] sm:$0xff]  ;;  %v384_v28 = vld [vmem:[%s3566_s3 + $0x28] sm:$0xff] }
   0xe   : > { %s3763_s18 = smov (!%p257_p4, %s2159_s18), 1  ;;  %2112 = vset.pattern.permute.xlu1 %v2170_v1  ;;  %734 = vperm.xlu0 %2111, %v379_v15   ;;  %v385_v31 = vld [vmem:[%s3566_s3 + $0x30] sm:$0xff]  ;;  %v386_v34 = vld [vmem:[%s3566_s3 + $0x38] sm:$0xff]  ;;  %v387_v37 = vld [vmem:[%s3566_s3 + $0x40] sm:$0xff] }
   0xf   : > { %s2082_s22 = sshll.u32 %s3763_s18, 8  ;;  %744 = vperm.xlu1 %2112, %v381_v19   ;;  %v388_v40 = vld [vmem:[%s3566_s3 + $0x48] sm:$0xff]  ;;  %v389_v43 = vld [vmem:[%s3566_s3 + $0x50] sm:$0xff]  ;;  %v315_v45 = vld [vmem:[%s3564_s1] sm:$0xff] }
  0x10   : > { %s2229_s25 = scalar_lea.vmem %s3563_s0, %s2082_s22  ;;  %v390_v46 = vld [vmem:[%s3566_s3 + $0x58] sm:$0xff]  ;;  %v391_v47 = vld [vmem:[%s3566_s3 + $0x60] sm:$0xff]  ;;  %v316_v48 = vld [vmem:[%s3564_s1 + $0x8] sm:$0xff]  ;;  %s3484_s30 = scalar_lea.vmem %s3567_s4, %s2082_s22 }
  0x11   : > { %v314_v2 = vld [vmem:[%s2229_s25 + $0xf8] sm:$0xff]  ;;  %v313_v3 = vld [vmem:[%s2229_s25 + $0xf0] sm:$0xff]  ;;  %v312_v4 = vld [vmem:[%s2229_s25 + $0xe8] sm:$0xff]  ;;  %s1951_s22 = sshll.u32 %s3763_s18, 3 }
  0x12   : > { %411 = vmatprep.subr.mxu0 %v314_v2  ;;  %v311_v5 = vld [vmem:[%s2229_s25 + $0xe0] sm:$0xff]  ;;  %v310_v6 = vld [vmem:[%s2229_s25 + $0xd8] sm:$0xff]  ;;  %v309_v7 = vld [vmem:[%s2229_s25 + $0xd0] sm:$0xff]  ;;  %739 = vperm.xlu0 %2111, %v380_v18   ;;  %s282_s8 = scalar_lea.vmem %s3568_s5, %s1951_s22 }
  0x13   : > { %412 = vmatpush1.msra.mxu0 %v313_v3  ;;  %v308_v8 = vld [vmem:[%s2229_s25 + $0xc8] sm:$0xff]  ;;  %v307_v9 = vld [vmem:[%s2229_s25 + $0xc0] sm:$0xff]  ;;  %v306_v10 = vld [vmem:[%s2229_s25 + $0xb8] sm:$0xff]  ;;  %749 = vperm.xlu1 %2112, %v382_v22  }
  0x14   : > { %413 = vmatprep.subr.mxu0 %v312_v4  ;;  %v305_v11 = vld [vmem:[%s2229_s25 + $0xb0] sm:$0xff]  ;;  %v304_v12 = vld [vmem:[%s2229_s25 + $0xa8] sm:$0xff]  ;;  %v303_v13 = vld [vmem:[%s2229_s25 + $0xa0] sm:$0xff] }
  0x15   : > { %414 = vmatpush1.msra.mxu0 %v311_v5  ;;  %v302_v14 = vld [vmem:[%s2229_s25 + $0x98] sm:$0xff]  ;;  %v301_v16 = vld [vmem:[%s2229_s25 + $0x90] sm:$0xff]  ;;  %v300_v17 = vld [vmem:[%s2229_s25 + $0x88] sm:$0xff] }
  0x16   : > { %415 = vmatprep.subr.mxu0 %v310_v6  ;;  %v299_v20 = vld [vmem:[%s2229_s25 + $0x80] sm:$0xff]  ;;  %v298_v21 = vld [vmem:[%s2229_s25 + $0x78] sm:$0xff]  ;;  %v297_v23 = vld [vmem:[%s2229_s25 + $0x70] sm:$0xff]  ;;  %754 = vperm.xlu0 %2111, %v383_v25  }
  0x17   : > { %416 = vmatpush1.msra.mxu0 %v309_v7  ;;  %v296_v24 = vld [vmem:[%s2229_s25 + $0x68] sm:$0xff]  ;;  %v295_v26 = vld [vmem:[%s2229_s25 + $0x60] sm:$0xff]  ;;  %v294_v27 = vld [vmem:[%s2229_s25 + $0x58] sm:$0xff]  ;;  %759 = vperm.xlu1 %2112, %v384_v28  }
  0x18   : > { %417 = vmatprep.subr.mxu0 %v308_v8  ;;  %v293_v29 = vld [vmem:[%s2229_s25 + $0x50] sm:$0xff]  ;;  %v292_v30 = vld [vmem:[%s2229_s25 + $0x48] sm:$0xff]  ;;  %v291_v32 = vld [vmem:[%s2229_s25 + $0x40] sm:$0xff] }
  0x19   : > { %418 = vmatpush1.msra.mxu0 %v307_v9  ;;  %v290_v33 = vld [vmem:[%s2229_s25 + $0x38] sm:$0xff]  ;;  %v289_v35 = vld [vmem:[%s2229_s25 + $0x30] sm:$0xff]  ;;  %v288_v36 = vld [vmem:[%s2229_s25 + $0x28] sm:$0xff] }
  0x1a   : > { %419 = vmatprep.subr.mxu0 %v306_v10  ;;  %764 = vperm.xlu0 %2111, %v385_v31   ;;  %v287_v38 = vld [vmem:[%s2229_s25 + $0x20] sm:$0xff]  ;;  %v286_v39 = vld [vmem:[%s2229_s25 + $0x18] sm:$0xff]  ;;  %v285_v41 = vld [vmem:[%s2229_s25 + $0x10] sm:$0xff] }
  0x1b   : > { %420 = vmatpush1.msra.mxu0 %v305_v11  ;;  %769 = vperm.xlu1 %2112, %v386_v34   ;;  %v284_v42 = vld [vmem:[%s2229_s25 + $0x8] sm:$0xff]  ;;  %v283_v44 = vld [vmem:[%s2229_s25] sm:$0xff]  ;;  %v393_v50 = vld [vmem:[%s3566_s3 + $0x70] sm:$0xff] }
  0x1c   : > { %421 = vmatprep.subr.mxu0 %v304_v12  ;;  %v392_v49 = vld [vmem:[%s3566_s3 + $0x68] sm:$0xff]  ;;  %v317_v51 = vld [vmem:[%s3564_s1 + $0x10] sm:$0xff]  ;;  %v394_v52 = vld [vmem:[%s3566_s3 + $0x78] sm:$0xff] }
  0x1d   : > { %422 = vmatpush1.msra.mxu0 %v303_v13  ;;  %v395_v53 = vld [vmem:[%s3566_s3 + $0x80] sm:$0xff]  ;;  %v318_v54 = vld [vmem:[%s3564_s1 + $0x18] sm:$0xff]  ;;  %v396_v55 = vld [vmem:[%s3566_s3 + $0x88] sm:$0xff] }
  0x1e   : > { %423 = vmatprep.subr.mxu0 %v302_v14  ;;  %774 = vperm.xlu0 %2111, %v387_v37   ;;  %v397_v56 = vld [vmem:[%s3566_s3 + $0x90] sm:$0xff]  ;;  %v319_v57 = vld [vmem:[%s3564_s1 + $0x20] sm:$0xff]  ;;  %v398_v58 = vld [vmem:[%s3566_s3 + $0x98] sm:$0xff] }
  0x1f   : > { %424 = vmatpush1.msra.mxu0 %v301_v16  ;;  %779 = vperm.xlu1 %2112, %v388_v40   ;;  %v399_v59 = vld [vmem:[%s3566_s3 + $0xa0] sm:$0xff]  ;;  %v320_v60 = vld [vmem:[%s3564_s1 + $0x28] sm:$0xff]  ;;  %v401_v62 = vld [vmem:[%s3566_s3 + $0xb0] sm:$0xff] }
  0x20   : > { %425 = vmatprep.subr.mxu0 %v300_v17  ;;  %v400_v61 = vld [vmem:[%s3566_s3 + $0xa8] sm:$0xff]  ;;  %v321_v63 = vld [vmem:[%s3564_s1 + $0x30] sm:$0xff]  ;;  %v402_v1 = vld [vmem:[%s3566_s3 + $0xb8] sm:$0xff] }
  0x21   : > { %426 = vmatpush1.msra.mxu0 %v299_v20  ;;  %v403_v2 = vld [vmem:[%s3566_s3 + $0xc0] sm:$0xff]  ;;  %v322_v3 = vld [vmem:[%s3564_s1 + $0x38] sm:$0xff]  ;;  %v404_v4 = vld [vmem:[%s3566_s3 + $0xc8] sm:$0xff] }
  0x22   : > { %427 = vmatprep.subr.mxu0 %v298_v21  ;;  %784 = vperm.xlu0 %2111, %v389_v43   ;;  %v405_v5 = vld [vmem:[%s3566_s3 + $0xd0] sm:$0xff]  ;;  %v323_v6 = vld [vmem:[%s3564_s1 + $0x40] sm:$0xff]  ;;  %v406_v7 = vld [vmem:[%s3566_s3 + $0xd8] sm:$0xff] }
  0x23   : > { %428 = vmatpush1.msra.mxu0 %v297_v23  ;;  %789 = vperm.xlu1 %2112, %v390_v46   ;;  %v407_v8 = vld [vmem:[%s3566_s3 + $0xe0] sm:$0xff]  ;;  %v324_v9 = vld [vmem:[%s3564_s1 + $0x48] sm:$0xff]  ;;  %v409_v11 = vld [vmem:[%s3566_s3 + $0xf0] sm:$0xff] }
  0x24   : > { %429 = vmatprep.subr.mxu0 %v296_v24  ;;  %v408_v10 = vld [vmem:[%s3566_s3 + $0xe8] sm:$0xff]  ;;  %v325_v12 = vld [vmem:[%s3564_s1 + $0x50] sm:$0xff]  ;;  %v410_v13 = vld [vmem:[%s3566_s3 + $0xf8] sm:$0xff] }
  0x25   : > { %430 = vmatpush1.msra.mxu0 %v295_v26  ;;  %v326_v14 = vld [vmem:[%s3564_s1 + $0x58] sm:$0xff]  ;;  %v327_v15 = vld [vmem:[%s3564_s1 + $0x60] sm:$0xff]  ;;  %v328_v16 = vld [vmem:[%s3564_s1 + $0x68] sm:$0xff] }
  0x26   : > { %431 = vmatprep.subr.mxu0 %v294_v27  ;;  %794 = vperm.xlu0 %2111, %v391_v47   ;;  %v329_v17 = vld [vmem:[%s3564_s1 + $0x70] sm:$0xff]  ;;  %v330_v18 = vld [vmem:[%s3564_s1 + $0x78] sm:$0xff]  ;;  %v331_v19 = vld [vmem:[%s3564_s1 + $0x80] sm:$0xff] }
  0x27   : > { %432 = vmatpush1.msra.mxu0 %v293_v29  ;;  %799 = vperm.xlu1 %2112, %v392_v49   ;;  %v332_v20 = vld [vmem:[%s3564_s1 + $0x88] sm:$0xff]  ;;  %v333_v21 = vld [vmem:[%s3564_s1 + $0x90] sm:$0xff]  ;;  %v334_v22 = vld [vmem:[%s3564_s1 + $0x98] sm:$0xff] }
  0x28   : > { %433 = vmatprep.subr.mxu0 %v292_v30  ;;  %v335_v23 = vld [vmem:[%s3564_s1 + $0xa0] sm:$0xff]  ;;  %v336_v24 = vld [vmem:[%s3564_s1 + $0xa8] sm:$0xff]  ;;  %v337_v25 = vld [vmem:[%s3564_s1 + $0xb0] sm:$0xff] }
  0x29   : > { %434 = vmatpush1.msra.mxu0 %v291_v32  ;;  %v338_v26 = vld [vmem:[%s3564_s1 + $0xb8] sm:$0xff]  ;;  %v339_v27 = vld [vmem:[%s3564_s1 + $0xc0] sm:$0xff]  ;;  %v340_v28 = vld [vmem:[%s3564_s1 + $0xc8] sm:$0xff] }
  0x2a   : > { %435 = vmatprep.subr.mxu0 %v290_v33  ;;  %804 = vperm.xlu0 %2111, %v393_v50   ;;  %v341_v29 = vld [vmem:[%s3564_s1 + $0xd0] sm:$0xff]  ;;  %v342_v30 = vld [vmem:[%s3564_s1 + $0xd8] sm:$0xff]  ;;  %v343_v31 = vld [vmem:[%s3564_s1 + $0xe0] sm:$0xff] }
  0x2b   : > { %436 = vmatpush1.msra.mxu0 %v289_v35  ;;  %809 = vperm.xlu1 %2112, %v394_v52   ;;  %v344_v32 = vld [vmem:[%s3564_s1 + $0xe8] sm:$0xff]  ;;  %v345_v33 = vld [vmem:[%s3564_s1 + $0xf0] sm:$0xff]  ;;  %v346_v34 = vld [vmem:[%s3564_s1 + $0xf8] sm:$0xff] }
  0x2c   : > { %437 = vmatprep.subr.mxu0 %v288_v36 }
  0x2d   : > { %438 = vmatpush1.msra.mxu0 %v287_v38 }
  0x2e   : > { %439 = vmatprep.subr.mxu0 %v286_v39  ;;  %814 = vperm.xlu0 %2111, %v395_v53  }
  0x2f   : > { %440 = vmatpush1.msra.mxu0 %v285_v41  ;;  %819 = vperm.xlu1 %2112, %v396_v55  }
  0x30   : > { %441 = vmatprep.subr.mxu0 %v284_v42 }
  0x31   : > { %442 = vmatpush1.msra.mxu0 %v283_v44 }
  0x32   : > { %476 = vmatmul.mubr.f32.vlgmr.msra.gmra.mxu0 %v315_v45  ;;  %824 = vperm.xlu0 %2111, %v397_v56  }
  0x33   : > { %481 = vmatprep.mubr.f32.mxu0 %v2169_v0  ;;  %829 = vperm.xlu1 %2112, %v398_v58  }
  0x36   : > { %482 = vmatmul.mubr.f32.gmra.mxu0 %v316_v48  ;;  %834 = vperm.xlu0 %2111, %v399_v59  }
  0x37   : > { %487 = vmatprep.mubr.f32.mxu0 %v2169_v0  ;;  %839 = vperm.xlu1 %2112, %v400_v61  }
  0x3a   : > { %488 = vmatmul.mubr.f32.gmra.mxu0 %v317_v51  ;;  %844 = vperm.xlu0 %2111, %v401_v62  }
  0x3b   : > { %493 = vmatprep.mubr.f32.mxu0 %v2169_v0  ;;  %849 = vperm.xlu1 %2112, %v402_v1  }
  0x3e   : > { %494 = vmatmul.mubr.f32.gmra.mxu0 %v318_v54  ;;  %854 = vperm.xlu0 %2111, %v403_v2  }
  0x3f   : > { %499 = vmatprep.mubr.f32.mxu0 %v2169_v0  ;;  %859 = vperm.xlu1 %2112, %v404_v4  }
  0x42   : > { %500 = vmatmul.mubr.f32.gmra.mxu0 %v319_v57  ;;  %864 = vperm.xlu0 %2111, %v405_v5  }
  0x43   : > { %505 = vmatprep.mubr.f32.mxu0 %v2169_v0  ;;  %869 = vperm.xlu1 %2112, %v406_v7  }
  0x46   : > { %506 = vmatmul.mubr.f32.gmra.mxu0 %v320_v60  ;;  %874 = vperm.xlu0 %2111, %v407_v8  }
  0x47   : > { %511 = vmatprep.mubr.f32.mxu0 %v2169_v0  ;;  %879 = vperm.xlu1 %2112, %v408_v10  }
  0x4a   : > { %512 = vmatmul.mubr.f32.gmra.mxu0 %v321_v63  ;;  %884 = vperm.xlu0 %2111, %v409_v11  }
  0x4b   : > { %517 = vmatprep.mubr.f32.mxu0 %v2169_v0  ;;  %889 = vperm.xlu1 %2112, %v410_v13  }
  0x4e   : > { %518 = vmatmul.mubr.f32.gmra.mxu0 %v322_v3 }
  0x4f   : > { %523 = vmatprep.mubr.f32.mxu0 %v2169_v0 }
  0x52   : > { %524 = vmatmul.mubr.f32.gmra.mxu0 %v323_v6 }
  0x53   : > { %529 = vmatprep.mubr.f32.mxu0 %v2169_v0 }
  0x56   : > { %530 = vmatmul.mubr.f32.gmra.mxu0 %v324_v9 }
  0x57   : > { %535 = vmatprep.mubr.f32.mxu0 %v2169_v0 }
  0x5a   : > { %536 = vmatmul.mubr.f32.gmra.mxu0 %v325_v12 }
  0x5b   : > { %541 = vmatprep.mubr.f32.mxu0 %v2169_v0 }
  0x5e   : > { %542 = vmatmul.mubr.f32.gmra.mxu0 %v326_v14 }
  0x5f   : > { %547 = vmatprep.mubr.f32.mxu0 %v2169_v0 }
  0x62   : > { %548 = vmatmul.mubr.f32.gmra.mxu0 %v327_v15 }
  0x63   : > { %553 = vmatprep.mubr.f32.mxu0 %v2169_v0 }
  0x66   : > { %554 = vmatmul.mubr.f32.gmra.mxu0 %v328_v16 }
  0x67   : > { %559 = vmatprep.mubr.f32.mxu0 %v2169_v0 }
  0x6a   : > { %560 = vmatmul.mubr.f32.gmra.mxu0 %v329_v17 }
  0x6b   : > { %565 = vmatprep.mubr.f32.mxu0 %v2169_v0 }
  0x6e   : > { %566 = vmatmul.mubr.f32.gmra.mxu0 %v330_v18 }
  0x6f   : > { %571 = vmatprep.mubr.f32.mxu0 %v2169_v0 }
  0x72   : > { %572 = vmatmul.mubr.f32.gmra.mxu0 %v331_v19 }
  0x73   : > { %577 = vmatprep.mubr.f32.mxu0 %v2169_v0 }
  0x76   : > { %578 = vmatmul.mubr.f32.gmra.mxu0 %v332_v20 }
  0x77   : > { %583 = vmatprep.mubr.f32.mxu0 %v2169_v0 }
  0x7a   : > { %584 = vmatmul.mubr.f32.gmra.mxu0 %v333_v21 }
  0x7b   : > { %589 = vmatprep.mubr.f32.mxu0 %v2169_v0 }
  0x7e   : > { %590 = vmatmul.mubr.f32.gmra.mxu0 %v334_v22 }
  0x7f   : > { %595 = vmatprep.mubr.f32.mxu0 %v2169_v0 }
  0x82   : > { %596 = vmatmul.mubr.f32.gmra.mxu0 %v335_v23 }
  0x83   : > { %601 = vmatprep.mubr.f32.mxu0 %v2169_v0 }
  0x86   : > { %602 = vmatmul.mubr.f32.gmra.mxu0 %v336_v24 }
  0x87   : > { %607 = vmatprep.mubr.f32.mxu0 %v2169_v0 }
  0x89   : > { %v735_v38 = vpop.permute.xlu0 %734 }
  0x8a   : > { %608 = vmatmul.mubr.f32.gmra.mxu0 %v337_v25  ;;  %v745_v42 = vpop.permute.xlu1 %744 }
  0x8b   : > { %613 = vmatprep.mubr.f32.mxu0 %v2169_v0 }
  0x8d   : > { %v740_v50 = vpop.permute.xlu0 %739 }
  0x8e   : > { %614 = vmatmul.mubr.f32.gmra.mxu0 %v338_v26  ;;  %v750_v56 = vpop.permute.xlu1 %749 }
  0x8f   : > { %619 = vmatprep.mubr.f32.mxu0 %v2169_v0 }
  0x91   : > { %v755_v4 = vpop.permute.xlu0 %754 }
  0x92   : > { %620 = vmatmul.mubr.f32.gmra.mxu0 %v339_v27  ;;  %v760_v13 = vpop.permute.xlu1 %759 }
  0x93   : > { %625 = vmatprep.mubr.f32.mxu0 %v2169_v0 }
  0x95   : > { %v765_v22 = vpop.permute.xlu0 %764 }
  0x96   : > { %626 = vmatmul.mubr.f32.gmra.mxu0 %v340_v28 }
  0x97   : > { %631 = vmatprep.mubr.f32.mxu0 %v2169_v0 }
  0x9a   : > { %632 = vmatmul.mubr.f32.gmra.mxu0 %v341_v29 }
  0x9b   : > { %637 = vmatprep.mubr.f32.mxu0 %v2169_v0 }
  0x9e   : > { %638 = vmatmul.mubr.f32.gmra.mxu0 %v342_v30 }
  0x9f   : > { %643 = vmatprep.mubr.f32.mxu0 %v2169_v0 }
  0xa2   : > { %644 = vmatmul.mubr.f32.gmra.mxu0 %v343_v31  ;;  %v770_v31 = vpop.permute.xlu1 %769 }
  0xa3   : > { %649 = vmatprep.mubr.f32.mxu0 %v2169_v0 }
  0xa6   : > { %650 = vmatmul.mubr.f32.gmra.mxu0 %v344_v32 }
  0xa7   : > { %655 = vmatprep.mubr.f32.mxu0 %v2169_v0 }
  0xaa   : > { %656 = vmatmul.mubr.f32.gmra.mxu0 %v345_v33 }
  0xab   : > { %661 = vmatprep.mubr.f32.mxu0 %v2169_v0 }
  0xae   : > { %662 = vmatmul.mubr.f32.gmra.mxu0 %v346_v34 }
  0xf2   : > { %v477_v35 = vpop.f32.mrf.mxu0 }
  0xf3   : > { %v668_v40 = vmul.f32 2.0, %v477_v35 }
  0xf4   : > { %v479_v36 = vpop.f32.mrf.mxu0 }
  0xf5   : > { %v669_v41 = vmul.f32 2.0, %v479_v36  ;;  %v2486_v46 = vsub.f32 %v735_v38, %v668_v40  ;;  %v775_v40 = vpop.permute.xlu0 %774 }
  0xf6   : > { %v483_v37 = vpop.f32.mrf.mxu0 }
  0xf7   : > { %v670_v47 = vmul.f32 2.0, %v483_v37  ;;  %v2490_v49 = vsub.f32 %v735_v38, %v669_v41 }
  0xf8   : > { %v485_v39 = vpop.f32.mrf.mxu0 }
  0xf9   : > { %3655 = vst [vmem:[#allocation2_spill] sm:$0xff] %v2490_v49  ;;  %v671_v52 = vmul.f32 2.0, %v485_v39  ;;  %v2496_v58 = vsub.f32 %v740_v50, %v670_v47 }
  0xfa   : > { %v489_v43 = vpop.f32.mrf.mxu0 }
  0xfb   : > { %v672_v44 = vmul.f32 2.0, %v489_v43  ;;  %v2502_v63 = vsub.f32 %v740_v50, %v671_v52 }
  0xfc   : > { %v491_v45 = vpop.f32.mrf.mxu0 }
  0xfd   : > { %v2488_v0 = vsub.f32 %v745_v42, %v672_v44  ;;  %v673_v48 = vmul.f32 2.0, %v491_v45  ;;  %3657 = vst [vmem:[#allocation4_spill] sm:$0xff] %v2502_v63 }
  0xfe   : > { %v495_v51 = vpop.f32.mrf.mxu0 }
  0xff   : > { %v956_v53 = vmin.f32 %v2486_v46, %v2488_v0  ;;  %v2494_v54 = vsub.f32 %v745_v42, %v673_v48  ;;  %v674_v55 = vmul.f32 2.0, %v495_v51  ;;  %v780_v51 = vpop.permute.xlu1 %779 }
 0x100   : > { %v497_v57 = vpop.f32.mrf.mxu0 }
 0x101   : > { %3656 = vst [vmem:[#allocation3_spill] sm:$0xff] %v2494_v54  ;;  %v993_v59 = vmin.f32 %v2490_v49, %v2494_v54  ;;  %v2500_v60 = vsub.f32 %v750_v56, %v674_v55  ;;  %v675_v61 = vmul.f32 2.0, %v497_v57 }
 0x102   : > { %v501_v62 = vpop.f32.mrf.mxu0 }
 0x103   : > { %v957_v1 = vmin.f32 %v2496_v58, %v2500_v60  ;;  %v2506_v2 = vsub.f32 %v750_v56, %v675_v61  ;;  %v676_v3 = vmul.f32 2.0, %v501_v62 }
 0x104   : > { %v503_v5 = vpop.f32.mrf.mxu0 }
 0x105   : > { %3658 = vst [vmem:[#allocation5_spill] sm:$0xff] %v2506_v2  ;;  %v994_v6 = vmin.f32 %v2502_v63, %v2506_v2  ;;  %v2510_v7 = vsub.f32 %v755_v4, %v676_v3  ;;  %v677_v8 = vmul.f32 2.0, %v503_v5 }
 0x106   : > { %v507_v9 = vpop.f32.mrf.mxu0 }
 0x107   : > { %v958_v10 = vmin.f32 %v956_v53, %v2510_v7  ;;  %v2513_v11 = vsub.f32 %v755_v4, %v677_v8  ;;  %v678_v12 = vmul.f32 2.0, %v507_v9 }
 0x108   : > { %v509_v14 = vpop.f32.mrf.mxu0 }
 0x109   : > { %3659 = vst [vmem:[#allocation6_spill] sm:$0xff] %v2513_v11  ;;  %v995_v15 = vmin.f32 %v993_v59, %v2513_v11  ;;  %v2516_v16 = vsub.f32 %v760_v13, %v678_v12  ;;  %v679_v17 = vmul.f32 2.0, %v509_v14 }
 0x10a   : > { %v513_v18 = vpop.f32.mrf.mxu0 }
 0x10b   : > { %v959_v19 = vmin.f32 %v957_v1, %v2516_v16  ;;  %v2519_v20 = vsub.f32 %v760_v13, %v679_v17  ;;  %v680_v21 = vmul.f32 2.0, %v513_v18  ;;  %v785_v1 = vpop.permute.xlu0 %784 }
 0x10c   : > { %v515_v23 = vpop.f32.mrf.mxu0 }
 0x10d   : > { %3660 = vst [vmem:[#allocation7_spill] sm:$0xff] %v2519_v20  ;;  %v996_v24 = vmin.f32 %v994_v6, %v2519_v20  ;;  %v2522_v25 = vsub.f32 %v765_v22, %v680_v21  ;;  %v681_v26 = vmul.f32 2.0, %v515_v23 }
 0x10e   : > { %v519_v27 = vpop.f32.mrf.mxu0 }
 0x10f   : > { %v960_v28 = vmin.f32 %v958_v10, %v2522_v25  ;;  %v2525_v29 = vsub.f32 %v765_v22, %v681_v26  ;;  %v682_v30 = vmul.f32 2.0, %v519_v27  ;;  %v790_v26 = vpop.permute.xlu1 %789 }
 0x110   : > { %v521_v32 = vpop.f32.mrf.mxu0 }
 0x111   : > { %3661 = vst [vmem:[#allocation8_spill] sm:$0xff] %v2525_v29  ;;  %v997_v33 = vmin.f32 %v995_v15, %v2525_v29  ;;  %v2528_v34 = vsub.f32 %v770_v31, %v682_v30  ;;  %v683_v35 = vmul.f32 2.0, %v521_v32  ;;  %v795_v30 = vpop.permute.xlu0 %794 }
 0x112   : > { %v525_v36 = vpop.f32.mrf.mxu0 }
 0x113   : > { %v961_v37 = vmin.f32 %v959_v19, %v2528_v34  ;;  %v2531_v38 = vsub.f32 %v770_v31, %v683_v35  ;;  %v684_v39 = vmul.f32 2.0, %v525_v36  ;;  %v800_v32 = vpop.permute.xlu1 %799 }
 0x114   : > { %v527_v41 = vpop.f32.mrf.mxu0 }
 0x115   : > { %3662 = vst [vmem:[#allocation9_spill] sm:$0xff] %v2531_v38  ;;  %v998_v42 = vmin.f32 %v996_v24, %v2531_v38  ;;  %v2534_v43 = vsub.f32 %v775_v40, %v684_v39  ;;  %v685_v44 = vmul.f32 2.0, %v527_v41  ;;  %v805_v36 = vpop.permute.xlu0 %804 }
 0x116   : > { %v531_v45 = vpop.f32.mrf.mxu0 }
 0x117   : > { %3663 = vst [vmem:[#allocation10_spill] sm:$0xff] %v2534_v43  ;;  %v2537_v47 = vmin.f32 %v960_v28, %v2534_v43  ;;  %v2539_v48 = vsub.f32 %v775_v40, %v685_v44  ;;  %v686_v50 = vmul.f32 2.0, %v531_v45  ;;  %v810_v39 = vpop.permute.xlu1 %809 }
 0x118   : > { %v533_v52 = vpop.f32.mrf.mxu0 }
 0x119   : > { %3664 = vst [vmem:[#allocation11_spill] sm:$0xff] %v2539_v48  ;;  %v2542_v53 = vmin.f32 %v997_v33, %v2539_v48  ;;  %v2544_v55 = vsub.f32 %v780_v51, %v686_v50  ;;  %v687_v56 = vmul.f32 2.0, %v533_v52 }
 0x11a   : > { %v537_v57 = vpop.f32.mrf.mxu0 }
 0x11b   : > { %3665 = vst [vmem:[#allocation12_spill] sm:$0xff] %v2544_v55  ;;  %v2547_v59 = vmin.f32 %v961_v37, %v2544_v55  ;;  %v2549_v61 = vsub.f32 %v780_v51, %v687_v56  ;;  %v688_v62 = vmul.f32 2.0, %v537_v57  ;;  %v2562_v45 = vpop.permute.xlu1 %819 }
 0x11c   : > { %v539_v3 = vpop.f32.mrf.mxu0 }
 0x11d   : > { %3666 = vst [vmem:[#allocation13_spill] sm:$0xff] %v2549_v61  ;;  %v2552_v4 = vmin.f32 %v998_v42, %v2549_v61  ;;  %v2554_v5 = vsub.f32 %v785_v1, %v688_v62  ;;  %v689_v6 = vmul.f32 2.0, %v539_v3  ;;  %v815_v42 = vpop.permute.xlu0 %814 }
 0x11e   : > { %v543_v8 = vpop.f32.mrf.mxu0 }
 0x11f   : > { %3667 = vst [vmem:[#allocation14_spill] sm:$0xff] %v2554_v5  ;;  %v964_v9 = vmin.f32 %v2537_v47, %v2554_v5  ;;  %v2558_v10 = vsub.f32 %v785_v1, %v689_v6  ;;  %v2572_v56 = vpop.permute.xlu1 %829  ;;  %v690_v1 = vmul.f32 2.0, %v543_v8 }
 0x120   : > { %v545_v12 = vpop.f32.mrf.mxu0 }
 0x121   : > { %v2568_v51 = vpop.permute.xlu0 %824  ;;  %v691_v3 = vmul.f32 2.0, %v545_v12  ;;  %v2586_v54 = vsub.f32 %v790_v26, %v690_v1 }
 0x122   : > { %v549_v14 = vpop.f32.mrf.mxu0 }
 0x123   : > { %v692_v13 = vmul.f32 2.0, %v549_v14  ;;  %v2582_v38 = vpop.permute.xlu1 %839  ;;  %3668 = vst [vmem:[#allocation15_spill] sm:$0xff] %v2586_v54  ;;  %v2588_v63 = vsub.f32 %v790_v26, %v691_v3 }
 0x124   : > { %v551_v15 = vpop.f32.mrf.mxu0 }
 0x125   : > { %v2578_v6 = vpop.permute.xlu0 %834  ;;  %v693_v48 = vmul.f32 2.0, %v551_v15  ;;  %3669 = vst [vmem:[#allocation16_spill] sm:$0xff] %v2588_v63  ;;  %v2590_v49 = vsub.f32 %v795_v30, %v692_v13  ;;  %v965_v13 = vmin.f32 %v2547_v59, %v2586_v54 }
 0x126   : > { %v555_v17 = vpop.f32.mrf.mxu0 }
 0x127   : > { %v694_v29 = vmul.f32 2.0, %v555_v17  ;;  %3670 = vst [vmem:[#allocation17_spill] sm:$0xff] %v2590_v49  ;;  %v2594_v12 = vsub.f32 %v795_v30, %v693_v48  ;;  %v1002_v48 = vmin.f32 %v2552_v4, %v2588_v63 }
 0x128   : > { %v557_v18 = vpop.f32.mrf.mxu0 }
 0x129   : > { %v695_v11 = vmul.f32 2.0, %v557_v18  ;;  %3671 = vst [vmem:[#allocation18_spill] sm:$0xff] %v2594_v12  ;;  %v2596_v15 = vpop.permute.xlu0 %844  ;;  %v2598_v55 = vsub.f32 %v800_v32, %v694_v29 }
 0x12a   : > { %v561_v19 = vpop.f32.mrf.mxu0 }
 0x12b   : > { %v696_v2 = vmul.f32 2.0, %v561_v19  ;;  %v2602_v18 = vsub.f32 %v800_v32, %v695_v11  ;;  %v3673_v11 = vmin.f32 %v2542_v53, %v2558_v10  ;;  %v967_v1 = vmin.f32 %v965_v13, %v2598_v55 }
 0x12c   : > { %v563_v21 = vpop.f32.mrf.mxu0 }
 0x12d   : > { %v697_v14 = vmul.f32 2.0, %v563_v21  ;;  %3672 = vst [vmem:[#allocation19_spill] sm:$0xff] %v2602_v18  ;;  %v2604_v19 = vsub.f32 %v805_v36, %v696_v2  ;;  %v966_v21 = vmin.f32 %v964_v9, %v2590_v49  ;;  %v1003_v2 = vmin.f32 %v3673_v11, %v2594_v12  ;;  %v2628_v53 = vpop.permute.xlu0 %854 }
 0x12e   : > { %v567_v22 = vpop.f32.mrf.mxu0 }
 0x12f   : > { %v698_v5 = vmul.f32 2.0, %v567_v22  ;;  %v2611_v22 = vpop.permute.xlu1 %849  ;;  %v2619_v32 = vsub.f32 %v805_v36, %v697_v14  ;;  %v968_v49 = vmin.f32 %v966_v21, %v2604_v19 }
 0x130   : > { %v569_v23 = vpop.f32.mrf.mxu0 }
 0x131   : > { %v699_v26 = vmul.f32 2.0, %v569_v23  ;;  %3674 = vst [vmem:[#allocation20_spill] sm:$0xff] %v2619_v32  ;;  %v2621_v23 = vsub.f32 %v810_v39, %v698_v5 }
 0x132   : > { %v573_v24 = vpop.f32.mrf.mxu0 }
 0x133   : > { %v700_v30 = vmul.f32 2.0, %v573_v24  ;;  %v1004_v24 = vmin.f32 %v1002_v48, %v2602_v18  ;;  %v2626_v54 = vsub.f32 %v810_v39, %v699_v26  ;;  %v860_v48 = vpop.permute.xlu1 %859 }
 0x134   : > { %v575_v27 = vpop.f32.mrf.mxu0 }
 0x135   : > { %v701_v59 = vmul.f32 2.0, %v575_v27  ;;  %3675 = vst [vmem:[#allocation21_spill] sm:$0xff] %v2626_v54  ;;  %v2630_v36 = vsub.f32 %v815_v42, %v700_v30 }
 0x136   : > { %v579_v28 = vpop.f32.mrf.mxu0 }
 0x137   : > { %v702_v4 = vmul.f32 2.0, %v579_v28  ;;  %v1005_v28 = vmin.f32 %v1003_v2, %v2619_v32  ;;  %v970_v30 = vmin.f32 %v968_v49, %v2630_v36  ;;  %v865_v49 = vpop.permute.xlu0 %864 }
 0x138   : > { %v581_v31 = vpop.f32.mrf.mxu0 }
 0x139   : > { %v703_v3 = vmul.f32 2.0, %v581_v31  ;;  %v969_v31 = vmin.f32 %v967_v1, %v2621_v23  ;;  %v2637_v39 = vsub.f32 %v2562_v45, %v702_v4 }
 0x13a   : > { %v585_v33 = vpop.f32.mrf.mxu0 }
 0x13b   : > { %v704_v9 = vmul.f32 2.0, %v585_v33  ;;  %v2634_v33 = vsub.f32 %v815_v42, %v701_v59 }
 0x13c   : > { %v587_v35 = vpop.f32.mrf.mxu0 }
 0x13d   : > { %v705_v43 = vmul.f32 2.0, %v587_v35  ;;  %3676 = vst [vmem:[#allocation22_spill] sm:$0xff] %v2634_v33  ;;  %v2640_v35 = vsub.f32 %v2562_v45, %v703_v3  ;;  %v2643_v26 = vsub.f32 %v2568_v51, %v704_v9  ;;  %v1007_v1 = vmin.f32 %v1005_v28, %v2634_v33 }
 0x13e   : > { %v591_v37 = vpop.f32.mrf.mxu0 }
 0x13f   : > { %v706_v5 = vmul.f32 2.0, %v591_v37  ;;  %3677 = vst [vmem:[#allocation23_spill] sm:$0xff] %v2640_v35  ;;  %v2648_v21 = vsub.f32 %v2568_v51, %v705_v43 }
 0x140   : > { %v593_v40 = vpop.f32.mrf.mxu0 }
 0x141   : > { %v707_v14 = vmul.f32 2.0, %v593_v40  ;;  %3678 = vst [vmem:[#allocation24_spill] sm:$0xff] %v2648_v21  ;;  %v2654_v45 = vsub.f32 %v2572_v56, %v706_v5  ;;  %v870_v5 = vpop.permute.xlu1 %869 }
 0x142   : > { %v597_v41 = vpop.f32.mrf.mxu0 }
 0x143   : > { %v708_v27 = vmul.f32 2.0, %v597_v41  ;;  %v1006_v41 = vmin.f32 %v1004_v24, %v2626_v54  ;;  %v2657_v2 = vsub.f32 %v2572_v56, %v707_v14  ;;  %v972_v56 = vmin.f32 %v970_v30, %v2643_v26 }
 0x144   : > { %v599_v44 = vpop.f32.mrf.mxu0  ;;  %v1009_v24 = vmin.f32 %v1007_v1, %v2648_v21 }
 0x145   : > { %v709_v13 = vmul.f32 2.0, %v599_v44  ;;  %3679 = vst [vmem:[#allocation25_spill] sm:$0xff] %v2657_v2  ;;  %v1008_v4 = vmin.f32 %v1006_v41, %v2640_v35 }
 0x146   : > { %v2564_v47 = vpop.f32.mrf.mxu0 }
 0x147   : > { %v710_v37 = vmul.f32 2.0, %v2564_v47  ;;  %v2660_v47 = vsub.f32 %v2578_v6, %v708_v27  ;;  %v2664_v43 = vsub.f32 %v2578_v6, %v709_v13  ;;  %v1010_v27 = vmin.f32 %v1008_v4, %v2657_v2 }
 0x148   : > { %v2566_v50 = vpop.f32.mrf.mxu0 }
 0x149   : > { %v711_v42 = vmul.f32 2.0, %v2566_v50  ;;  %3680 = vst [vmem:[#allocation26_spill] sm:$0xff] %v2664_v43  ;;  %v2672_v3 = vsub.f32 %v2582_v38, %v710_v37  ;;  %v974_v28 = vmin.f32 %v972_v56, %v2660_v47  ;;  %v1011_v37 = vmin.f32 %v1009_v24, %v2664_v43 }
 0x14a   : > { %v2570_v52 = vpop.f32.mrf.mxu0 }
 0x14b   : > { %v712_v44 = vmul.f32 2.0, %v2570_v52  ;;  %v971_v52 = vmin.f32 %v969_v31, %v2637_v39  ;;  %v2676_v6 = vsub.f32 %v2582_v38, %v711_v42 }
 0x14c   : > { %v2574_v57 = vpop.f32.mrf.mxu0 }
 0x14d   : > { %v713_v50 = vmul.f32 2.0, %v2574_v57  ;;  %3681 = vst [vmem:[#allocation27_spill] sm:$0xff] %v2676_v6  ;;  %v2679_v57 = vsub.f32 %v2596_v15, %v712_v44  ;;  %v973_v14 = vmin.f32 %v971_v52, %v2654_v45 }
 0x14e   : > { %v2576_v62 = vpop.f32.mrf.mxu0 }
 0x14f   : > { %v714_v51 = vmul.f32 2.0, %v2576_v62  ;;  %v2688_v38 = vsub.f32 %v2596_v15, %v713_v50  ;;  %v975_v42 = vmin.f32 %v973_v14, %v2672_v3  ;;  %v976_v4 = vmin.f32 %v974_v28, %v2679_v57  ;;  %v880_v28 = vpop.permute.xlu1 %879 }
 0x150   : > { %v2580_v61 = vpop.f32.mrf.mxu0 }
 0x151   : > { %v715_v62 = vmul.f32 2.0, %v2580_v61  ;;  %3682 = vst [vmem:[#allocation28_spill] sm:$0xff] %v2688_v38  ;;  %v2691_v41 = vsub.f32 %v2611_v22, %v714_v51  ;;  %v875_v51 = vpop.permute.xlu0 %874 }
 0x152   : > { %v2584_v20 = vpop.f32.mrf.mxu0 }
 0x153   : > { %v716_v31 = vmul.f32 2.0, %v2584_v20  ;;  %v1012_v20 = vmin.f32 %v1010_v27, %v2676_v6  ;;  %v2700_v15 = vsub.f32 %v2611_v22, %v715_v62 }
 0x154   : > { %v2592_v8 = vpop.f32.mrf.mxu0 }
 0x155   : > { %v717_v44 = vmul.f32 2.0, %v2592_v8  ;;  %3683 = vst [vmem:[#allocation29_spill] sm:$0xff] %v2700_v15  ;;  %v2703_v56 = vsub.f32 %v2628_v53, %v716_v31 }
 0x156   : > { %v2600_v17 = vpop.f32.mrf.mxu0 }
 0x157   : > { %v718_v61 = vmul.f32 2.0, %v2600_v17  ;;  %v2710_v22 = vsub.f32 %v2628_v53, %v717_v44 }
 0x158   : > { %v2613_v29 = vpop.f32.mrf.mxu0 }
 0x159   : > { %v719_v30 = vmul.f32 2.0, %v2613_v29  ;;  %v1013_v29 = vmin.f32 %v1011_v37, %v2688_v38  ;;  %v2707_v43 = vsub.f32 %v860_v48, %v718_v61  ;;  %3684 = vst [vmem:[#allocation30_spill] sm:$0xff] %v2710_v22  ;;  %v978_v61 = vmin.f32 %v976_v4, %v2703_v56 }
 0x15a   : > { %v633_v63 = vpop.f32.mrf.mxu0 }
 0x15b   : > { %v720_v1 = vmul.f32 2.0, %v633_v63  ;;  %v977_v63 = vmin.f32 %v975_v42, %v2691_v41 }
 0x15c   : > { %v635_v11 = vpop.f32.mrf.mxu0 }
 0x15d   : > { %v721_v17 = vmul.f32 2.0, %v635_v11  ;;  %v2714_v62 = vsub.f32 %v865_v49, %v720_v1  ;;  %v979_v44 = vmin.f32 %v977_v63, %v2707_v43  ;;  %v885_v1 = vpop.permute.xlu0 %884  ;;  %v890_v63 = vpop.permute.xlu1 %889 }
 0x15e   : > { %v639_v40 = vpop.f32.mrf.mxu0 }
 0x15f   : > { %v722_v50 = vmul.f32 2.0, %v639_v40  ;;  %v2712_v40 = vsub.f32 %v860_v48, %v719_v30  ;;  %v2720_v42 = vsub.f32 %v865_v49, %v721_v17 }
 0x160   : > { %v641_v59 = vpop.f32.mrf.mxu0 }
 0x161   : > { %v723_v24 = vmul.f32 2.0, %v641_v59  ;;  %3685 = vst [vmem:[#allocation31_spill] sm:$0xff] %v2712_v40  ;;  %v1014_v59 = vmin.f32 %v1012_v20, %v2700_v15  ;;  %3686 = vst [vmem:[#allocation32_spill] sm:$0xff] %v2720_v42  ;;  %v1015_v20 = vmin.f32 %v1013_v29, %v2710_v22 }
 0x162   : > { %v645_v9 = vpop.f32.mrf.mxu0 }
 0x163   : > { %v724_v14 = vmul.f32 2.0, %v645_v9  ;;  %v2717_v9 = vsub.f32 %v870_v5, %v722_v50  ;;  %v1016_v50 = vmin.f32 %v1014_v59, %v2712_v40 }
 0x164   : > { %v647_v13 = vpop.f32.mrf.mxu0 }
 0x165   : > { %v725_v31 = vmul.f32 2.0, %v647_v13  ;;  %v2724_v53 = vsub.f32 %v875_v51, %v724_v14 }
 0x166   : > { %v651_v52 = vpop.f32.mrf.mxu0 }
 0x167   : > { %v726_v27 = vmul.f32 2.0, %v651_v52  ;;  %v2722_v52 = vsub.f32 %v870_v5, %v723_v24  ;;  %v2732_v4 = vsub.f32 %v875_v51, %v725_v31  ;;  %v981_v5 = vmin.f32 %v979_v44, %v2717_v9 }
 0x168   : > { %v653_v8 = vpop.f32.mrf.mxu0 }
 0x169   : > { %v727_v37 = vmul.f32 2.0, %v653_v8  ;;  %3687 = vst [vmem:[#allocation33_spill] sm:$0xff] %v2722_v52  ;;  %v2727_v30 = vsub.f32 %v880_v28, %v726_v27  ;;  %v980_v8 = vmin.f32 %v978_v61, %v2714_v62  ;;  %3688 = vst [vmem:[#allocation34_spill] sm:$0xff] %v2732_v4  ;;  %v1017_v27 = vmin.f32 %v1015_v20, %v2720_v42 }
 0x16a   : > { %v657_v11 = vpop.f32.mrf.mxu0 }
 0x16b   : > { %v728_v38 = vmul.f32 2.0, %v657_v11  ;;  %v2735_v17 = vsub.f32 %v880_v28, %v727_v37  ;;  %v1018_v11 = vmin.f32 %v1016_v50, %v2722_v52  ;;  %v982_v29 = vmin.f32 %v980_v8, %v2724_v53 }
 0x16c   : > { %v659_v48 = vpop.f32.mrf.mxu0  ;;  %v983_v61 = vmin.f32 %v981_v5, %v2727_v30  ;;  %v1019_v28 = vmin.f32 %v1017_v27, %v2732_v4  ;;  %v1030_v52 = vlaneseq }
 0x16d   : > { %v729_v13 = vmul.f32 2.0, %v659_v48  ;;  %3689 = vst [vmem:[#allocation35_spill] sm:$0xff] %v2735_v17  ;;  %v2737_v24 = vsub.f32 %v885_v1, %v728_v38  ;;  %v1020_v38 = vmin.f32 %v1018_v11, %v2735_v17 }
 0x16e   : > { %v663_v49 = vpop.f32.mrf.mxu0 }
 0x16f   : > { %3690 = vst [vmem:[#allocation36_spill] sm:$0xff] %v2737_v24  ;;  %v730_v14 = vmul.f32 2.0, %v663_v49  ;;  %v2743_v51 = vsub.f32 %v885_v1, %v729_v13  ;;  %v984_v37 = vmin.f32 %v982_v29, %v2737_v24  ;;  %v2757_v29 = vshrl.u32 %v1030_v52, 7  ;;  %v3694_v52 = vld [vmem:[#allocation10_spill] sm:$0xff] }
 0x170   : > { %v665_v59 = vpop.f32.mrf.mxu0 }
 0x171   : > { %3691 = vst [vmem:[#allocation37_spill] sm:$0xff] %v2743_v51  ;;  %v2745_v31 = vsub.f32 %v890_v63, %v730_v14  ;;  %v731_v48 = vmul.f32 2.0, %v665_v59  ;;  %v1021_v50 = vmin.f32 %v1019_v28, %v2743_v51  ;;  %v2782_v28 = vadd.s32 8, %v2757_v29 }
 0x172   : > { %v2824_v51 = vadd.s32 120, %v2757_v29  ;;  %v2827_v42 = vadd.s32 128, %v2757_v29  ;;  %v2830_v40 = vadd.s32 136, %v2757_v29  ;;  %v2833_v22 = vadd.s32 144, %v2757_v29 }
 0x173   : > { %3692 = vst [vmem:[#allocation38_spill] sm:$0xff] %v2745_v31  ;;  %v985_v44 = vmin.f32 %v983_v61, %v2745_v31  ;;  %v2751_v20 = vsub.f32 %v890_v63, %v731_v48  ;;  %v3696_v63 = vld [vmem:[#allocation14_spill] sm:$0xff]  ;;  %v2836_v15 = vadd.s32 152, %v2757_v29  ;;  %v2839_v6 = vadd.s32 160, %v2757_v29 }
 0x174   : > { %v2842_v2 = vadd.s32 168, %v2757_v29  ;;  %v2851_v21 = vadd.s32 192, %v2757_v29  ;;  %v2854_v35 = vadd.s32 200, %v2757_v29  ;;  %v2857_v33 = vadd.s32 208, %v2757_v29 }
 0x175   : > { %3693 = vst [vmem:[#allocation39_spill] sm:$0xff] %v2751_v20  ;;  %v986_v8 = vmin.f32 %v984_v37, %v985_v44  ;;  %v1022_v49 = vmin.f32 %v1020_v38, %v2751_v20  ;;  %v2785_v38 = vadd.s32 16, %v2757_v29  ;;  %v2788_v37 = vadd.s32 24, %v2757_v29 }
 0x176   : > { %v2791_v44 = vadd.s32 32, %v2757_v29  ;;  %v2821_v20 = vadd.s32 112, %v2757_v29  ;;  %3702 = vst [vmem:[#allocation42_spill] sm:$0xff] %v2857_v33  ;;  %v2860_v54 = vadd.s32 216, %v2757_v29  ;;  %v2863_v32 = vadd.s32 224, %v2757_v29  ;;  %v3708_v33 = vld [vmem:[#allocation17_spill] sm:$0xff] }
 0x177   : > { %v987_v13 = vrot.slane %v986_v8, 4  ;;  %v1023_v1 = vmin.f32 %v1021_v50, %v1022_v49  ;;  %3697 = vst [vmem:[#allocation10_spill] sm:$0xff] %v2788_v37  ;;  %v2794_v50 = vadd.s32 40, %v2757_v29  ;;  %v2800_v49 = vadd.s32 56, %v2757_v29 }
 0x178   : > { %3703 = vst [vmem:[#allocation43_spill] sm:$0xff] %v2860_v54  ;;  %3704 = vst [vmem:[#allocation44_spill] sm:$0xff] %v2863_v32  ;;  %v2866_v18 = vadd.s32 232, %v2757_v29  ;;  %v2869_v12 = vadd.s32 240, %v2757_v29 }
 0x179   : > { %v988_v5 = vmin.f32 %v986_v8, %v987_v13  ;;  %v1024_v27 = vrot.slane %v1023_v1, 4  ;;  %v2797_v8 = vadd.s32 48, %v2757_v29  ;;  %3699 = vst [vmem:[#allocation14_spill] sm:$0xff] %v2800_v49  ;;  %v2803_v13 = vadd.s32 64, %v2757_v29 }
 0x17a   : > { %3705 = vst [vmem:[#allocation45_spill] sm:$0xff] %v2866_v18  ;;  %3706 = vst [vmem:[#allocation46_spill] sm:$0xff] %v2869_v12  ;;  %v2888_v18 = vadd.s32 248, %v2757_v29 }
 0x17b   : > { %v989_v14 = vrot.slane %v988_v5, 2  ;;  %v1025_v61 = vmin.f32 %v1023_v1, %v1024_v27  ;;  %3700 = vst [vmem:[#allocation40_spill] sm:$0xff] %v2803_v13  ;;  %v2806_v1 = vadd.s32 72, %v2757_v29  ;;  %v2818_v27 = vadd.s32 104, %v2757_v29 }
 0x17d   : > { %v990_v59 = vmin.f32 %v988_v5, %v989_v14  ;;  %v1026_v48 = vrot.slane %v1025_v61, 2  ;;  %3701 = vst [vmem:[#allocation41_spill] sm:$0xff] %v2806_v1  ;;  %v2809_v5 = vadd.s32 80, %v2757_v29  ;;  %v2812_v14 = vadd.s32 88, %v2757_v29 }
 0x17f   : > { %v991_v4 = vrot.slane %v990_v59, 1  ;;  %v1027_v17 = vmin.f32 %v1025_v61, %v1026_v48  ;;  %v2845_v61 = vadd.s32 176, %v2757_v29  ;;  %v2848_v48 = vadd.s32 184, %v2757_v29 }
 0x181   : > { %v2755_v11 = vmin.f32 %v990_v59, %v991_v4  ;;  %v3695_v4 = vld [vmem:[#allocation12_spill] sm:$0xff]  ;;  %v2815_v59 = vadd.s32 96, %v2757_v29  ;;  %v1028_v31 = vrot.slane %v1027_v17, 1 }
 0x182   : > { %3698 = vst [vmem:[#allocation12_spill] sm:$0xff] %v2791_v44 }
 0x183   : > { %vm1063_vm0 = vcmp.eq.f32.partialorder %v2486_v46, %v2755_v11  ;;  %vm1065_vm1 = vcmp.eq.f32.partialorder %v2496_v58, %v2755_v11  ;;  %vm1067_vm2 = vcmp.eq.f32.partialorder %v2488_v0, %v2755_v11  ;;  %vm1069_vm3 = vcmp.eq.f32.partialorder %v2500_v60, %v2755_v11  ;;  %v3707_v46 = vld [vmem:[#allocation15_spill] sm:$0xff] }
 0x184   : > { %vm1071_vm4 = vcmp.eq.f32.partialorder %v2510_v7, %v2755_v11  ;;  %vm1073_vm5 = vcmp.eq.f32.partialorder %v2516_v16, %v2755_v11  ;;  %vm1075_vm6 = vcmp.eq.f32.partialorder %v2522_v25, %v2755_v11  ;;  %vm1077_vm7 = vcmp.eq.f32.partialorder %v2528_v34, %v2755_v11 }
 0x185   : > { %vm1079_vm8 = vcmp.eq.f32.partialorder %v3694_v52, %v2755_v11  ;;  %vm1081_vm9 = vcmp.eq.f32.partialorder %v3695_v4, %v2755_v11  ;;  %vm1083_vm10 = vcmp.eq.f32.partialorder %v3696_v63, %v2755_v11  ;;  %v1127_v24 = vsel %vm1063_vm0, %v2757_v29, 256  ;;  %v3709_v52 = vld [vmem:[#allocation2_spill] sm:$0xff]  ;;  %v3711_v4 = vld [vmem:[#allocation3_spill] sm:$0xff]  ;;  %v3715_v63 = vld [vmem:[#allocation8_spill] sm:$0xff] }
 0x186   : > { %v1129_v54 = vsel %vm1065_vm1, %v2782_v28, 256  ;;  %v1131_v32 = vsel %vm1067_vm2, %v2785_v38, 256  ;;  %v1133_v12 = vsel %vm1069_vm3, %v2788_v37, 256  ;;  %vm1085_vm11 = vcmp.eq.f32.partialorder %v3707_v46, %v2755_v11 }
 0x187   : > { %vm1087_vm12 = vcmp.eq.f32.partialorder %v3708_v33, %v2755_v11  ;;  %vm1089_vm13 = vcmp.eq.f32.partialorder %v2598_v55, %v2755_v11  ;;  %v1135_v0 = vsel %vm1071_vm4, %v2791_v44, 256  ;;  %v1137_v58 = vsel %vm1073_vm5, %v2794_v50, 256 }
 0x188   : > { %v1139_v60 = vsel %vm1075_vm6, %v2797_v8, 256  ;;  %v1141_v37 = vsel %vm1077_vm7, %v2800_v49, 256  ;;  %v1143_v7 = vsel %vm1079_vm8, %v2803_v13, 256  ;;  %vm1191_vm14 = vcmp.lt.s32.totalorder %v1127_v24, %v1131_v32 }
 0x189   : > { %vm1193_vm15 = vcmp.lt.s32.totalorder %v1129_v54, %v1133_v12  ;;  %v2916_v44 = vmin.f32 %v1027_v17, %v1028_v31  ;;  %v1145_v16 = vsel %vm1081_vm9, %v2806_v1, 256  ;;  %v1147_v25 = vsel %vm1083_vm10, %v2809_v5, 256  ;;  %v3710_v17 = vld [vmem:[#allocation4_spill] sm:$0xff]  ;;  %v3712_v1 = vld [vmem:[#allocation5_spill] sm:$0xff] }
 0x18a   : > { %v1192_v34 = vsel %vm1191_vm14, %v1127_v24, %v1131_v32  ;;  %v1194_v49 = vsel %vm1193_vm15, %v1129_v54, %v1133_v12  ;;  %v3713_v54 = vld [vmem:[#allocation6_spill] sm:$0xff]  ;;  %v3714_v12 = vld [vmem:[#allocation7_spill] sm:$0xff]  ;;  %vm1093_vm14 = vcmp.eq.f32.partialorder %v2621_v23, %v2755_v11  ;;  %v1153_v46 = vsel %vm1089_vm13, %v2818_v27, 256 }
 0x18b   : > { %vm1195_vm0 = vcmp.lt.s32.totalorder %v1192_v34, %v1135_v0  ;;  %vm1197_vm1 = vcmp.lt.s32.totalorder %v1194_v49, %v1137_v58  ;;  %vm1064_vm2 = vcmp.eq.f32.partialorder %v3709_v52, %v2916_v44  ;;  %vm1066_vm3 = vcmp.eq.f32.partialorder %v3710_v17, %v2916_v44  ;;  %v3728_v52 = vld [vmem:[#allocation16_spill] sm:$0xff]  ;;  %v3732_v17 = vld [vmem:[#allocation21_spill] sm:$0xff] }
 0x18c   : > { %v1196_v31 = vsel %vm1195_vm0, %v1192_v34, %v1135_v0  ;;  %v1198_v13 = vsel %vm1197_vm1, %v1194_v49, %v1137_v58  ;;  %vm1068_vm4 = vcmp.eq.f32.partialorder %v3711_v4, %v2916_v44  ;;  %vm1072_vm8 = vcmp.eq.f32.partialorder %v3713_v54, %v2916_v44  ;;  %v3716_v49 = vld [vmem:[#allocation9_spill] sm:$0xff]  ;;  %v3717_v0 = vld [vmem:[#allocation11_spill] sm:$0xff] }
 0x18d   : > { %vm1199_vm6 = vcmp.lt.s32.totalorder %v1196_v31, %v1139_v60  ;;  %vm1201_vm7 = vcmp.lt.s32.totalorder %v1198_v13, %v1141_v37  ;;  %vm1074_vm9 = vcmp.eq.f32.partialorder %v3714_v12, %v2916_v44  ;;  %v3718_v58 = vld [vmem:[#allocation13_spill] sm:$0xff]  ;;  %v1151_v34 = vsel %vm1087_vm12, %v2815_v59, 256 }
 0x18e   : > { %v1200_v32 = vsel %vm1199_vm6, %v1196_v31, %v1139_v60  ;;  %v1202_v24 = vsel %vm1201_vm7, %v1198_v13, %v1141_v37  ;;  %v1149_v60 = vsel %vm1085_vm11, %v2812_v14, 256  ;;  %vm1091_vm7 = vcmp.eq.f32.partialorder %v2604_v19, %v2755_v11 }
 0x18f   : > { %vm1203_vm15 = vcmp.lt.s32.totalorder %v1200_v32, %v1143_v7  ;;  %vm1205_vm0 = vcmp.lt.s32.totalorder %v1202_v24, %v1145_v16  ;;  %vm1095_vm11 = vcmp.eq.f32.partialorder %v2630_v36, %v2755_v11  ;;  %v1155_v19 = vsel %vm1091_vm7, %v2821_v20, 256 }
 0x190   : > { %v1204_v37 = vsel %vm1203_vm15, %v1200_v32, %v1143_v7  ;;  %v1206_v13 = vsel %vm1205_vm0, %v1202_v24, %v1145_v16  ;;  %vm1097_vm15 = vcmp.eq.f32.partialorder %v2637_v39, %v2755_v11  ;;  %v1157_v23 = vsel %vm1093_vm14, %v2824_v51, 256  ;;  %v348_v32 = vld [vmem:[%s3565_s2 + $0x8] sm:$0xff] }
 0x191   : > { %vm1207_vm1 = vcmp.lt.s32.totalorder %v1204_v37, %v1147_v25  ;;  %vm1209_vm10 = vcmp.lt.s32.totalorder %v1206_v13, %v1149_v60  ;;  %vm1099_vm12 = vcmp.eq.f32.partialorder %v2643_v26, %v2755_v11  ;;  %vm1101_vm13 = vcmp.eq.f32.partialorder %v2654_v45, %v2755_v11  ;;  %1589 = vmatprep.mubr.f32.mxu1 %v348_v32 }
 0x192   : > { %v1208_v7 = vsel %vm1207_vm1, %v1204_v37, %v1147_v25  ;;  %v1210_v16 = vsel %vm1209_vm10, %v1206_v13, %v1149_v60  ;;  %v1159_v55 = vsel %vm1095_vm11, %v2827_v42, 256  ;;  %v1161_v36 = vsel %vm1097_vm15, %v2830_v40, 256 }
 0x193   : > { %vm1211_vm0 = vcmp.lt.s32.totalorder %v1208_v7, %v1151_v34  ;;  %vm1213_vm6 = vcmp.lt.s32.totalorder %v1210_v16, %v1153_v46  ;;  %vm1103_vm14 = vcmp.eq.f32.partialorder %v2660_v47, %v2755_v11  ;;  %v1163_v26 = vsel %vm1099_vm12, %v2833_v22, 256 }
 0x194   : > { %v1212_v33 = vsel %vm1211_vm0, %v1208_v7, %v1151_v34  ;;  %v1214_v31 = vsel %vm1213_vm6, %v1210_v16, %v1153_v46  ;;  %vm1105_vm6 = vcmp.eq.f32.partialorder %v2672_v3, %v2755_v11  ;;  %v1165_v45 = vsel %vm1101_vm13, %v2836_v15, 256 }
 0x195   : > { %vm1215_vm10 = vcmp.lt.s32.totalorder %v1212_v33, %v1155_v19  ;;  %vm1217_vm1 = vcmp.lt.s32.totalorder %v1214_v31, %v1157_v23  ;;  %vm1107_vm11 = vcmp.eq.f32.partialorder %v2679_v57, %v2755_v11  ;;  %vm1109_vm15 = vcmp.eq.f32.partialorder %v2691_v41, %v2755_v11 }
 0x196   : > { %v1216_v39 = vsel %vm1215_vm10, %v1212_v33, %v1155_v19  ;;  %v1218_v25 = vsel %vm1217_vm1, %v1214_v31, %v1157_v23  ;;  %v1167_v47 = vsel %vm1103_vm14, %v2839_v6, 256  ;;  %v1169_v3 = vsel %vm1105_vm6, %v2842_v2, 256  ;;  %v3720_v23 = vld [vmem:[#allocation43_spill] sm:$0xff] }
 0x197   : > { %vm1219_vm7 = vcmp.lt.s32.totalorder %v1216_v39, %v1159_v55  ;;  %vm1221_vm0 = vcmp.lt.s32.totalorder %v1218_v25, %v1161_v36  ;;  %vm1111_vm12 = vcmp.eq.f32.partialorder %v2703_v56, %v2755_v11  ;;  %vm1113_vm13 = vcmp.eq.f32.partialorder %v2707_v43, %v2755_v11 }
 0x198   : > { %v1220_v24 = vsel %vm1219_vm7, %v1216_v39, %v1159_v55  ;;  %v1222_v60 = vsel %vm1221_vm0, %v1218_v25, %v1161_v36  ;;  %v1171_v57 = vsel %vm1107_vm11, %v2845_v61, 256  ;;  %v1173_v41 = vsel %vm1109_vm15, %v2848_v48, 256  ;;  %v3721_v55 = vld [vmem:[#allocation36_spill] sm:$0xff]  ;;  %v3722_v36 = vld [vmem:[#allocation38_spill] sm:$0xff]  ;;  %v3724_v25 = vld [vmem:[#allocation45_spill] sm:$0xff] }
 0x199   : > { %vm1223_vm10 = vcmp.lt.s32.totalorder %v1220_v24, %v1163_v26  ;;  %vm1225_vm1 = vcmp.lt.s32.totalorder %v1222_v60, %v1165_v45  ;;  %vm1115_vm14 = vcmp.eq.f32.partialorder %v2714_v62, %v2755_v11  ;;  %vm1117_vm6 = vcmp.eq.f32.partialorder %v2717_v9, %v2755_v11  ;;  %v3719_v62 = vld [vmem:[#allocation42_spill] sm:$0xff] }
 0x19a   : > { %v1224_v37 = vsel %vm1223_vm10, %v1220_v24, %v1163_v26  ;;  %v1226_v13 = vsel %vm1225_vm1, %v1222_v60, %v1165_v45  ;;  %v1175_v56 = vsel %vm1111_vm12, %v2851_v21, 256  ;;  %v1177_v43 = vsel %vm1113_vm13, %v2854_v35, 256  ;;  %v3725_v45 = vld [vmem:[#allocation46_spill] sm:$0xff] }
 0x19b   : > { %vm1227_vm7 = vcmp.lt.s32.totalorder %v1224_v37, %v1167_v47  ;;  %vm1229_vm0 = vcmp.lt.s32.totalorder %v1226_v13, %v1169_v3  ;;  %vm1119_vm11 = vcmp.eq.f32.partialorder %v2724_v53, %v2755_v11  ;;  %vm1121_vm15 = vcmp.eq.f32.partialorder %v2727_v30, %v2755_v11  ;;  %v3723_v53 = vld [vmem:[#allocation44_spill] sm:$0xff] }
 0x19c   : > { %v1228_v34 = vsel %vm1227_vm7, %v1224_v37, %v1167_v47  ;;  %v1230_v46 = vsel %vm1229_vm0, %v1226_v13, %v1169_v3  ;;  %v1179_v19 = vsel %vm1115_vm14, %v3719_v62, 256  ;;  %v1181_v9 = vsel %vm1117_vm6, %v3720_v23, 256 }
 0x19d   : > { %vm1231_vm10 = vcmp.lt.s32.totalorder %v1228_v34, %v1171_v57  ;;  %vm1233_vm1 = vcmp.lt.s32.totalorder %v1230_v46, %v1173_v41  ;;  %vm1123_vm12 = vcmp.eq.f32.partialorder %v3721_v55, %v2755_v11  ;;  %vm1125_vm13 = vcmp.eq.f32.partialorder %v3722_v36, %v2755_v11 }
 0x19e   : > { %v1232_v7 = vsel %vm1231_vm10, %v1228_v34, %v1171_v57  ;;  %v1234_v16 = vsel %vm1233_vm1, %v1230_v46, %v1173_v41  ;;  %v1183_v39 = vsel %vm1119_vm11, %v3723_v53, 256  ;;  %v1185_v30 = vsel %vm1121_vm15, %v3724_v25, 256  ;;  %v3726_v34 = vld [vmem:[#allocation10_spill] sm:$0xff] }
 0x19f   : > { %vm1235_vm7 = vcmp.lt.s32.totalorder %v1232_v7, %v1175_v56  ;;  %vm1237_vm0 = vcmp.lt.s32.totalorder %v1234_v16, %v1177_v43  ;;  %v1187_v24 = vsel %vm1123_vm12, %v3725_v45, 256  ;;  %v1189_v60 = vsel %vm1125_vm13, %v2888_v18, 256 }
 0x1a0   : > { %v1236_v33 = vsel %vm1235_vm7, %v1232_v7, %v1175_v56  ;;  %v1238_v31 = vsel %vm1237_vm0, %v1234_v16, %v1177_v43  ;;  %v1128_v13 = vsel %vm1064_vm2, %v2757_v29, 256  ;;  %v1132_v57 = vsel %vm1068_vm4, %v2785_v38, 256  ;;  %v3729_v43 = vld [vmem:[#allocation18_spill] sm:$0xff]  ;;  %v3730_v7 = vld [vmem:[#allocation19_spill] sm:$0xff]  ;;  %v3731_v16 = vld [vmem:[#allocation20_spill] sm:$0xff] }
 0x1a1   : > { %vm1239_vm10 = vcmp.lt.s32.totalorder %v1236_v33, %v1179_v19  ;;  %vm1241_vm1 = vcmp.lt.s32.totalorder %v1238_v31, %v1181_v9  ;;  %v1130_v41 = vsel %vm1066_vm3, %v2782_v28, 256  ;;  %vm1086_vm2 = vcmp.eq.f32.partialorder %v3728_v52, %v2916_v44 }
 0x1a2   : > { %v1240_v32 = vsel %vm1239_vm10, %v1236_v33, %v1179_v19  ;;  %v1242_v26 = vsel %vm1241_vm1, %v1238_v31, %v1181_v9  ;;  %vm1088_vm15 = vcmp.eq.f32.partialorder %v3729_v43, %v2916_v44  ;;  %vm1090_vm4 = vcmp.eq.f32.partialorder %v3730_v7, %v2916_v44  ;;  %v3734_v33 = vld [vmem:[#allocation22_spill] sm:$0xff] }
 0x1a3   : > { %vm1243_vm5 = vcmp.lt.s32.totalorder %v1240_v32, %v1183_v39  ;;  %vm1245_vm14 = vcmp.lt.s32.totalorder %v1242_v26, %v1185_v30  ;;  %vm1092_vm0 = vcmp.eq.f32.partialorder %v3731_v16, %v2916_v44  ;;  %vm1262_vm3 = vcmp.lt.s32.totalorder %v1128_v13, %v1132_v57 }
 0x1a4   : > { %v1244_v47 = vsel %vm1243_vm5, %v1240_v32, %v1183_v39  ;;  %v1246_v3 = vsel %vm1245_vm14, %v1242_v26, %v1185_v30  ;;  %vm3727_vm5 = vcmp.eq.f32.partialorder %v3712_v1, %v2916_v44  ;;  %vm1094_vm12 = vcmp.eq.f32.partialorder %v3732_v17, %v2916_v44  ;;  %v3733_v1 = vld [vmem:[#allocation12_spill] sm:$0xff]  ;;  %v3735_v39 = vld [vmem:[#allocation23_spill] sm:$0xff]  ;;  %v3737_v26 = vld [vmem:[#allocation14_spill] sm:$0xff] }
 0x1a5   : > { %vm1247_vm6 = vcmp.lt.s32.totalorder %v1244_v47, %v1187_v24  ;;  %vm1249_vm7 = vcmp.lt.s32.totalorder %v1246_v3, %v1189_v60  ;;  %v1134_v46 = vsel %vm3727_vm5, %v3726_v34, 256  ;;  %v1136_v19 = vsel %vm1072_vm8, %v3733_v1, 256 }
 0x1a6   : > { %v1248_v37 = vsel %vm1247_vm6, %v1244_v47, %v1187_v24  ;;  %v1250_v11 = vsel %vm1249_vm7, %v1246_v3, %v1189_v60  ;;  %v1263_v9 = vsel %vm1262_vm3, %v1128_v13, %v1132_v57  ;;  %vm1264_vm13 = vcmp.lt.s32.totalorder %v1130_v41, %v1134_v46  ;;  %v3739_v60 = vld [vmem:[#allocation24_spill] sm:$0xff] }
 0x1a7   : > { %vm1251_vm11 = vcmp.lt.s32.totalorder %v1248_v37, %v1250_v11  ;;  %vm1096_vm1 = vcmp.eq.f32.partialorder %v3734_v33, %v2916_v44  ;;  %v1138_v31 = vsel %vm1074_vm9, %v2794_v50, 256  ;;  %v1265_v55 = vsel %vm1264_vm13, %v1130_v41, %v1134_v46  ;;  %v3740_v47 = vld [vmem:[#allocation40_spill] sm:$0xff] }
 0x1a8   : > { %v1252_v56 = vsel %vm1251_vm11, %v1248_v37, %v1250_v11  ;;  %vm1266_vm14 = vcmp.lt.s32.totalorder %v1263_v9, %v1136_v19  ;;  %vm1098_vm6 = vcmp.eq.f32.partialorder %v3735_v39, %v2916_v44  ;;  %vm3736_vm8 = vcmp.eq.f32.partialorder %v3715_v63, %v2916_v44  ;;  %v3742_v37 = vld [vmem:[#allocation41_spill] sm:$0xff] }
 0x1a9   : > { %v1253_v4 = vrot.slane %v1252_v56, 4  ;;  %v1140_v54 = vsel %vm3736_vm8, %v2797_v8, 256  ;;  %v1267_v30 = vsel %vm1266_vm14, %v1263_v9, %v1136_v19  ;;  %vm1268_vm7 = vcmp.lt.s32.totalorder %v1265_v55, %v1138_v31  ;;  %v3746_v19 = vld [vmem:[#allocation26_spill] sm:$0xff] }
 0x1aa   : > { %vm3738_vm11 = vcmp.eq.f32.partialorder %v3716_v49, %v2916_v44  ;;  %v1269_v24 = vsel %vm1268_vm7, %v1265_v55, %v1138_v31  ;;  %vm1270_vm9 = vcmp.lt.s32.totalorder %v1267_v30, %v1140_v54  ;;  %vm1100_vm5 = vcmp.eq.f32.partialorder %v3739_v60, %v2916_v44  ;;  %v3747_v55 = vld [vmem:[#allocation27_spill] sm:$0xff] }
 0x1ab   : > { %vm1254_vm10 = vcmp.lt.s32.totalorder %v1252_v56, %v1253_v4  ;;  %v1142_v12 = vsel %vm3738_vm11, %v3737_v26, 256  ;;  %vm3741_vm3 = vcmp.eq.f32.partialorder %v3717_v0, %v2916_v44  ;;  %v1271_v63 = vsel %vm1270_vm9, %v1267_v30, %v1140_v54  ;;  %v3748_v54 = vld [vmem:[#allocation28_spill] sm:$0xff]  ;;  %v3751_v60 = vld [vmem:[#allocation31_spill] sm:$0xff] }
 0x1ac   : > { %v1255_v36 = vsel %vm1254_vm10, %v1252_v56, %v1253_v4  ;;  %v1144_v3 = vsel %vm3741_vm3, %v3740_v47, 256  ;;  %vm1272_vm13 = vcmp.lt.s32.totalorder %v1269_v24, %v1142_v12  ;;  %vm3743_vm14 = vcmp.eq.f32.partialorder %v3718_v58, %v2916_v44  ;;  %v3745_v58 = vld [vmem:[#allocation25_spill] sm:$0xff] }
 0x1ad   : > { %v1256_v32 = vrot.slane %v1255_v36, 2  ;;  %v1146_v11 = vsel %vm3743_vm14, %v3742_v37, 256  ;;  %v1273_v49 = vsel %vm1272_vm13, %v1269_v24, %v1142_v12  ;;  %vm1274_vm8 = vcmp.lt.s32.totalorder %v1271_v63, %v1144_v3  ;;  %v3749_v24 = vld [vmem:[#allocation29_spill] sm:$0xff] }
 0x1ae   : > { %vm3744_vm7 = vcmp.eq.f32.partialorder %v2558_v10, %v2916_v44  ;;  %v1275_v41 = vsel %vm1274_vm8, %v1271_v63, %v1144_v3  ;;  %vm1276_vm11 = vcmp.lt.s32.totalorder %v1273_v49, %v1146_v11  ;;  %v1150_v46 = vsel %vm1086_vm2, %v2812_v14, 256  ;;  %v3750_v63 = vld [vmem:[#allocation30_spill] sm:$0xff] }
 0x1af   : > { %vm1257_vm10 = vcmp.lt.s32.totalorder %v1255_v36, %v1256_v32  ;;  %v1148_v57 = vsel %vm3744_vm7, %v2809_v5, 256  ;;  %v1277_v56 = vsel %vm1276_vm11, %v1273_v49, %v1146_v11  ;;  %vm1102_vm3 = vcmp.eq.f32.partialorder %v3745_v58, %v2916_v44  ;;  %v3753_v58 = vld [vmem:[#allocation33_spill] sm:$0xff] }
 0x1b0   : > { %v1258_v13 = vsel %vm1257_vm10, %v1255_v36, %v1256_v32  ;;  %vm1278_vm9 = vcmp.lt.s32.totalorder %v1275_v41, %v1148_v57  ;;  %v1152_v4 = vsel %vm1088_vm15, %v2815_v59, 256  ;;  %vm1280_vm13 = vcmp.lt.s32.totalorder %v1277_v56, %v1150_v46 }
 0x1b1   : > { %v1259_v0 = vrot.slane %v1258_v13, 1  ;;  %v1279_v10 = vsel %vm1278_vm9, %v1275_v41, %v1148_v57  ;;  %vm1104_vm10 = vcmp.eq.f32.partialorder %v3746_v19, %v2916_v44  ;;  %v1154_v52 = vsel %vm1090_vm4, %v2818_v27, 256  ;;  %v3754_v19 = vld [vmem:[#allocation34_spill] sm:$0xff] }
 0x1b2   : > { %v1281_v9 = vsel %vm1280_vm13, %v1277_v56, %v1150_v46  ;;  %vm1282_vm2 = vcmp.lt.s32.totalorder %v1279_v10, %v1152_v4  ;;  %v1156_v31 = vsel %vm1092_vm0, %v2821_v20, 256  ;;  %vm1106_vm8 = vcmp.eq.f32.partialorder %v3747_v55, %v2916_v44  ;;  %v3755_v55 = vld [vmem:[#allocation35_spill] sm:$0xff] }
 0x1b3   : > { %vm1260_vm14 = vcmp.lt.s32.totalorder %v1258_v13, %v1259_v0  ;;  %v1283_v43 = vsel %vm1282_vm2, %v1279_v10, %v1152_v4  ;;  %vm1284_vm15 = vcmp.lt.s32.totalorder %v1281_v9, %v1154_v52  ;;  %v1158_v36 = vsel %vm1094_vm12, %v2824_v51, 256 }
 0x1b4   : > { %v1285_v7 = vsel %vm1284_vm15, %v1281_v9, %v1154_v52  ;;  %vm1286_vm4 = vcmp.lt.s32.totalorder %v1283_v43, %v1156_v31  ;;  %vm1108_vm7 = vcmp.eq.f32.partialorder %v3748_v54, %v2916_v44  ;;  %v1160_v16 = vsel %vm1096_vm1, %v2827_v42, 256  ;;  %v3756_v54 = vld [vmem:[#allocation37_spill] sm:$0xff] }
 0x1b5   : > { %v1287_v30 = vsel %vm1286_vm4, %v1283_v43, %v1156_v31  ;;  %vm1288_vm0 = vcmp.lt.s32.totalorder %v1285_v7, %v1158_v36  ;;  %v3109_v32 = vsel %vm1260_vm14, %v1258_v13, %v1259_v0  ;;  %v1162_v17 = vsel %vm1098_vm6, %v2830_v40, 256  ;;  %v3752_v0 = vld [vmem:[#allocation32_spill] sm:$0xff] }
 0x1b6   : > { %v1289_v12 = vsel %vm1288_vm0, %v1285_v7, %v1158_v36  ;;  %vm1290_vm12 = vcmp.lt.s32.totalorder %v1287_v30, %v1160_v16  ;;  %vm1110_vm11 = vcmp.eq.f32.partialorder %v3749_v24, %v2916_v44  ;;  %v1164_v33 = vsel %vm1100_vm5, %v2833_v22, 256 }
 0x1b7   : > { %v1291_v3 = vsel %vm1290_vm12, %v1287_v30, %v1160_v16  ;;  %vm1292_vm1 = vcmp.lt.s32.totalorder %v1289_v12, %v1162_v17  ;;  %vm1112_vm9 = vcmp.eq.f32.partialorder %v3750_v63, %v2916_v44  ;;  %v1166_v39 = vsel %vm1102_vm3, %v2836_v15, 256 }
 0x1b8   : > { %v1293_v11 = vsel %vm1292_vm1, %v1289_v12, %v1162_v17  ;;  %vm1294_vm6 = vcmp.lt.s32.totalorder %v1291_v3, %v1164_v33  ;;  %v1168_v49 = vsel %vm1104_vm10, %v2839_v6, 256  ;;  %vm1343_vm5 = vcmp.eq.s32.totalorder %v2794_v50, %v3109_v32  ;;  %v3757_v17 = vld [vmem:[#allocation39_spill] sm:$0xff] }
 0x1b9   : > { %v1295_v13 = vsel %vm1294_vm6, %v1291_v3, %v1164_v33  ;;  %vm1296_vm13 = vcmp.lt.s32.totalorder %v1293_v11, %v1166_v39  ;;  %vm1114_vm2 = vcmp.eq.f32.partialorder %v3751_v60, %v2916_v44  ;;  %v1170_v57 = vsel %vm1106_vm8, %v2842_v2, 256 }
 0x1ba   : > { %v1297_v41 = vsel %vm1296_vm13, %v1293_v11, %v1166_v39  ;;  %vm1298_vm3 = vcmp.lt.s32.totalorder %v1295_v13, %v1168_v49  ;;  %vm1116_vm14 = vcmp.eq.f32.partialorder %v3752_v0, %v2916_v44  ;;  %v1172_v46 = vsel %vm1108_vm7, %v2845_v61, 256 }
 0x1bb   : > { %v1299_v56 = vsel %vm1298_vm3, %v1295_v13, %v1168_v49  ;;  %vm1300_vm10 = vcmp.lt.s32.totalorder %v1297_v41, %v1170_v57  ;;  %vm1118_vm15 = vcmp.eq.f32.partialorder %v3753_v58, %v2916_v44  ;;  %v1174_v4 = vsel %vm1110_vm11, %v2848_v48, 256 }
 0x1bc   : > { %v1301_v10 = vsel %vm1300_vm10, %v1297_v41, %v1170_v57  ;;  %vm1302_vm8 = vcmp.lt.s32.totalorder %v1299_v56, %v1172_v46  ;;  %vm1120_vm4 = vcmp.eq.f32.partialorder %v3754_v19, %v2916_v44  ;;  %v1176_v52 = vsel %vm1112_vm9, %v2851_v21, 256 }
 0x1bd   : > { %v1303_v9 = vsel %vm1302_vm8, %v1299_v56, %v1172_v46  ;;  %vm1304_vm7 = vcmp.lt.s32.totalorder %v1301_v10, %v1174_v4  ;;  %v1178_v31 = vsel %vm1114_vm2, %v2854_v35, 256  ;;  %vm1385_vm12 = vcmp.eq.s32.totalorder %v3719_v62, %v3109_v32 }
 0x1be   : > { %v1305_v43 = vsel %vm1304_vm7, %v1301_v10, %v1174_v4  ;;  %vm1306_vm0 = vcmp.lt.s32.totalorder %v1303_v9, %v1176_v52  ;;  %vm1122_vm11 = vcmp.eq.f32.partialorder %v3755_v55, %v2916_v44  ;;  %v1180_v36 = vsel %vm1116_vm14, %v3719_v62, 256 }
 0x1bf   : > { %v1307_v7 = vsel %vm1306_vm0, %v1303_v9, %v1176_v52  ;;  %vm1308_vm1 = vcmp.lt.s32.totalorder %v1305_v43, %v1178_v31  ;;  %vm1124_vm9 = vcmp.eq.f32.partialorder %v3756_v54, %v2916_v44  ;;  %v1182_v16 = vsel %vm1118_vm15, %v3720_v23, 256 }
 0x1c0   : > { %v1309_v30 = vsel %vm1308_vm1, %v1305_v43, %v1178_v31  ;;  %vm1310_vm6 = vcmp.lt.s32.totalorder %v1307_v7, %v1180_v36  ;;  %vm1126_vm13 = vcmp.eq.f32.partialorder %v3757_v17, %v2916_v44  ;;  %v1184_v12 = vsel %vm1120_vm4, %v3723_v53, 256 }
 0x1c1   : > { %v1311_v24 = vsel %vm1310_vm6, %v1307_v7, %v1180_v36  ;;  %vm1312_vm2 = vcmp.lt.s32.totalorder %v1309_v30, %v1182_v16  ;;  %v1186_v33 = vsel %vm1122_vm11, %v3724_v25, 256  ;;  %v1188_v63 = vsel %vm1124_vm9, %v3725_v45, 256 }
 0x1c2   : > { %v1313_v3 = vsel %vm1312_vm2, %v1309_v30, %v1182_v16  ;;  %vm1314_vm3 = vcmp.lt.s32.totalorder %v1311_v24, %v1184_v12  ;;  %v1190_v11 = vsel %vm1126_vm13, %v2888_v18, 256  ;;  %v2171_v4 = vmov 1.0   ;;  %v2113_v30 = vld [vmem:[%s2229_s25 + $0x18] sm:$0xff] }
 0x1c3   : > { %v1315_v39 = vsel %vm1314_vm3, %v1311_v24, %v1184_v12  ;;  %vm1316_vm14 = vcmp.lt.s32.totalorder %v1313_v3, %v1186_v33  ;;  %vm1363_vm1 = vcmp.eq.s32.totalorder %v2824_v51, %v3109_v32  ;;  %vm1361_vm13 = vcmp.eq.s32.totalorder %v2821_v20, %v3109_v32  ;;  %v2114_v24 = vld [vmem:[%s2229_s25 + $0x8] sm:$0xff] }
 0x1c4   : > { %v1317_v49 = vsel %vm1316_vm14, %v1313_v3, %v1186_v33  ;;  %vm1318_vm10 = vcmp.lt.s32.totalorder %v1315_v39, %v1188_v63  ;;  %vm1359_vm3 = vcmp.eq.s32.totalorder %v2818_v27, %v3109_v32  ;;  %v2115_v3 = vld [vmem:[%s2229_s25 + $0x10] sm:$0xff] }
 0x1c5   : > { %v1319_v13 = vsel %vm1318_vm10, %v1315_v39, %v1188_v63  ;;  %vm1320_vm15 = vcmp.lt.s32.totalorder %v1317_v49, %v1190_v11  ;;  %v2116_v39 = vld [vmem:[%s2229_s25 + $0x28] sm:$0xff] }
 0x1c6   : > { %v1321_v60 = vsel %vm1320_vm15, %v1317_v49, %v1190_v11  ;;  %vm1357_vm15 = vcmp.eq.s32.totalorder %v2815_v59, %v3109_v32 }
 0x1c7   : > { %vm1322_vm8 = vcmp.lt.s32.totalorder %v1319_v13, %v1321_v60 }
 0x1c8   : > { %v1323_v44 = vsel %vm1322_vm8, %v1319_v13, %v1321_v60  ;;  %v2117_v13 = vld [vmem:[%s2229_s25] sm:$0xff] }
 0x1c9   : > { %v1324_v57 = vrot.slane %v1323_v44, 4 }
 0x1cb   : > { %vm1325_vm4 = vcmp.lt.s32.totalorder %v1323_v44, %v1324_v57 }
 0x1cc   : > { %v1326_v41 = vsel %vm1325_vm4, %v1323_v44, %v1324_v57  ;;  %vm1355_vm4 = vcmp.eq.s32.totalorder %v2812_v14, %v3109_v32  ;;  %v2118_v57 = vld [vmem:[%s2229_s25 + $0x20] sm:$0xff] }
 0x1cd   : > { %v1327_v0 = vrot.slane %v1326_v41, 2 }
 0x1cf   : > { %vm1328_vm7 = vcmp.lt.s32.totalorder %v1326_v41, %v1327_v0 }
 0x1d0   : > { %v1329_v46 = vsel %vm1328_vm7, %v1326_v41, %v1327_v0  ;;  %v2119_v0 = vld [vmem:[%s2229_s25 + $0x38] sm:$0xff] }
 0x1d1   : > { %v1330_v56 = vrot.slane %v1329_v46, 1 }
 0x1d3   : > { %vm1331_vm0 = vcmp.lt.s32.totalorder %v1329_v46, %v1330_v56 }
 0x1d4   : > { %v3184_v58 = vsel %vm1331_vm0, %v1329_v46, %v1330_v56  ;;  %vm1353_vm0 = vcmp.eq.s32.totalorder %v2809_v5, %v3109_v32 }
 0x1d5   : > { %vm1364_vm11 = vcmp.eq.s32.totalorder %v2824_v51, %v3184_v58  ;;  %vm1362_vm9 = vcmp.eq.s32.totalorder %v2821_v20, %v3184_v58  ;;  %vm1344_vm6 = vcmp.eq.s32.totalorder %v2794_v50, %v3184_v58  ;;  %vm1360_vm2 = vcmp.eq.s32.totalorder %v2818_v27, %v3184_v58  ;;  %v358_v51 = vld [vmem:[%s3565_s2 + $0x58] sm:$0xff]  ;;  %v357_v20 = vld [vmem:[%s3565_s2 + $0x50] sm:$0xff]  ;;  %v368_v27 = vld [vmem:[%s3565_s2 + $0xa8] sm:$0xff] }
 0x1d6   : > { %2016 = vmatprep.subr.msk.mxu1 %vm1364_vm11, %v2171_v4  ;;  %vm1386_vm14 = vcmp.eq.s32.totalorder %v3719_v62, %v3184_v58  ;;  %vm1358_vm10 = vcmp.eq.s32.totalorder %v2815_v59, %v3184_v58  ;;  %vm1356_vm8 = vcmp.eq.s32.totalorder %v2812_v14, %v3184_v58  ;;  %vm1354_vm7 = vcmp.eq.s32.totalorder %v2809_v5, %v3184_v58  ;;  %v361_v50 = vld [vmem:[%s3565_s2 + $0x70] sm:$0xff]  ;;  %v363_v5 = vld [vmem:[%s3565_s2 + $0x80] sm:$0xff]  ;;  %v366_v14 = vld [vmem:[%s3565_s2 + $0x98] sm:$0xff] }
 0x1d7   : > { %2017 = vmatpush1.msk.msra.mxu1 %vm1363_vm1, %v2171_v4  ;;  %vm1352_vm11 = vcmp.eq.s32.totalorder %v3742_v37, %v3184_v58  ;;  %vm1351_vm1 = vcmp.eq.s32.totalorder %v3742_v37, %v3109_v32  ;;  %v365_v59 = vld [vmem:[%s3565_s2 + $0x90] sm:$0xff] }
 0x1d8   : > { %2018 = vmatprep.subr.msk.mxu1 %vm1362_vm9, %v2171_v4  ;;  %vm1350_vm9 = vcmp.eq.s32.totalorder %v3740_v47, %v3184_v58  ;;  %v369_v62 = vld [vmem:[%s3565_s2 + $0xb0] sm:$0xff] }
 0x1d9   : > { %2019 = vmatpush1.msk.msra.mxu1 %vm1361_vm13, %v2171_v4  ;;  %vm1349_vm13 = vcmp.eq.s32.totalorder %v3740_v47, %v3109_v32  ;;  %v377_v47 = vld [vmem:[%s3565_s2 + $0xf0] sm:$0xff] }
 0x1da   : > { %2020 = vmatprep.subr.msk.mxu1 %vm1360_vm2, %v2171_v4  ;;  %vm1348_vm2 = vcmp.eq.s32.totalorder %v3737_v26, %v3184_v58 }
 0x1db   : > { %2021 = vmatpush1.msk.msra.mxu1 %vm1359_vm3, %v2171_v4  ;;  %vm1347_vm3 = vcmp.eq.s32.totalorder %v3737_v26, %v3109_v32  ;;  %v378_v26 = vld [vmem:[%s3565_s2 + $0xf8] sm:$0xff] }
 0x1dc   : > { %2022 = vmatprep.subr.msk.mxu1 %vm1358_vm10, %v2171_v4  ;;  %vm1346_vm10 = vcmp.eq.s32.totalorder %v2797_v8, %v3184_v58 }
 0x1dd   : > { %2023 = vmatpush1.msk.msra.mxu1 %vm1357_vm15, %v2171_v4  ;;  %vm1345_vm15 = vcmp.eq.s32.totalorder %v2797_v8, %v3109_v32  ;;  %v364_v8 = vld [vmem:[%s3565_s2 + $0x88] sm:$0xff] }
 0x1de   : > { %2024 = vmatprep.subr.msk.mxu1 %vm1356_vm8, %v2171_v4  ;;  %vm1342_vm8 = vcmp.eq.s32.totalorder %v3733_v1, %v3184_v58 }
 0x1df   : > { %2025 = vmatpush1.msk.msra.mxu1 %vm1355_vm4, %v2171_v4  ;;  %vm1341_vm4 = vcmp.eq.s32.totalorder %v3733_v1, %v3109_v32  ;;  %v375_v1 = vld [vmem:[%s3565_s2 + $0xe0] sm:$0xff] }
 0x1e0   : > { %2026 = vmatprep.subr.msk.mxu1 %vm1354_vm7, %v2171_v4  ;;  %vm1340_vm7 = vcmp.eq.s32.totalorder %v3726_v34, %v3184_v58 }
 0x1e1   : > { %2027 = vmatpush1.msk.msra.mxu1 %vm1353_vm0, %v2171_v4  ;;  %vm1337_vm0 = vcmp.eq.s32.totalorder %v2785_v38, %v3109_v32 }
 0x1e2   : > { %2028 = vmatprep.subr.msk.mxu1 %vm1352_vm11, %v2171_v4  ;;  %vm1336_vm11 = vcmp.eq.s32.totalorder %v2782_v28, %v3184_v58 }
 0x1e3   : > { %2029 = vmatpush1.msk.msra.mxu1 %vm1351_vm1, %v2171_v4  ;;  %vm1335_vm1 = vcmp.eq.s32.totalorder %v2782_v28, %v3109_v32  ;;  %v359_v28 = vld [vmem:[%s3565_s2 + $0x60] sm:$0xff] }
 0x1e4   : > { %2030 = vmatprep.subr.msk.mxu1 %vm1350_vm9, %v2171_v4  ;;  %vm1334_vm9 = vcmp.eq.s32.totalorder %v2757_v29, %v3184_v58 }
 0x1e5   : > { %2031 = vmatpush1.msk.msra.mxu1 %vm1349_vm13, %v2171_v4  ;;  %vm1333_vm13 = vcmp.eq.s32.totalorder %v2757_v29, %v3109_v32  ;;  %v360_v29 = vld [vmem:[%s3565_s2 + $0x68] sm:$0xff] }
 0x1e6   : > { %2032 = vmatprep.subr.msk.mxu1 %vm1348_vm2, %v2171_v4  ;;  %vm1396_vm2 = vcmp.eq.s32.totalorder %v2888_v18, %v3184_v58 }
 0x1e7   : > { %2033 = vmatpush1.msk.msra.mxu1 %vm1347_vm3, %v2171_v4  ;;  %vm1395_vm3 = vcmp.eq.s32.totalorder %v2888_v18, %v3109_v32  ;;  %v347_v18 = vld [vmem:[%s3565_s2] sm:$0xff] }
 0x1e8   : > { %2034 = vmatprep.subr.msk.mxu1 %vm1346_vm10, %v2171_v4  ;;  %vm1394_vm10 = vcmp.eq.s32.totalorder %v3725_v45, %v3184_v58 }
 0x1e9   : > { %2035 = vmatpush1.msk.msra.mxu1 %vm1345_vm15, %v2171_v4  ;;  %vm1393_vm15 = vcmp.eq.s32.totalorder %v3725_v45, %v3109_v32  ;;  %v373_v45 = vld [vmem:[%s3565_s2 + $0xd0] sm:$0xff] }
 0x1ea   : > { %2036 = vmatprep.subr.msk.mxu1 %vm1344_vm6, %v2171_v4  ;;  %vm1339_vm6 = vcmp.eq.s32.totalorder %v3726_v34, %v3109_v32  ;;  %v376_v34 = vld [vmem:[%s3565_s2 + $0xe8] sm:$0xff] }
 0x1eb   : > { %2037 = vmatpush1.msk.msra.mxu1 %vm1343_vm5, %v2171_v4  ;;  %vm1338_vm5 = vcmp.eq.s32.totalorder %v2785_v38, %v3184_v58  ;;  %v362_v38 = vld [vmem:[%s3565_s2 + $0x78] sm:$0xff] }
 0x1ec   : > { %2038 = vmatprep.subr.msk.mxu1 %vm1342_vm8, %v2171_v4  ;;  %vm1392_vm8 = vcmp.eq.s32.totalorder %v3724_v25, %v3184_v58 }
 0x1ed   : > { %2039 = vmatpush1.msk.msra.mxu1 %vm1341_vm4, %v2171_v4  ;;  %vm1391_vm4 = vcmp.eq.s32.totalorder %v3724_v25, %v3109_v32  ;;  %v374_v25 = vld [vmem:[%s3565_s2 + $0xd8] sm:$0xff] }
 0x1ee   : > { %2040 = vmatprep.subr.msk.mxu1 %vm1340_vm7, %v2171_v4  ;;  %vm1390_vm7 = vcmp.eq.s32.totalorder %v3723_v53, %v3184_v58 }
 0x1ef   : > { %2041 = vmatpush1.msk.msra.mxu1 %vm1339_vm6, %v2171_v4  ;;  %vm1389_vm6 = vcmp.eq.s32.totalorder %v3723_v53, %v3109_v32  ;;  %v371_v53 = vld [vmem:[%s3565_s2 + $0xc0] sm:$0xff] }
 0x1f0   : > { %2042 = vmatprep.subr.msk.mxu1 %vm1338_vm5, %v2171_v4  ;;  %vm1388_vm5 = vcmp.eq.s32.totalorder %v3720_v23, %v3184_v58 }
 0x1f1   : > { %2043 = vmatpush1.msk.msra.mxu1 %vm1337_vm0, %v2171_v4  ;;  %vm1387_vm0 = vcmp.eq.s32.totalorder %v3720_v23, %v3109_v32  ;;  %v372_v23 = vld [vmem:[%s3565_s2 + $0xc8] sm:$0xff] }
 0x1f2   : > { %2044 = vmatprep.subr.msk.mxu1 %vm1336_vm11, %v2171_v4  ;;  %vm1384_vm11 = vcmp.eq.s32.totalorder %v2854_v35, %v3184_v58 }
 0x1f3   : > { %2045 = vmatpush1.msk.msra.mxu1 %vm1335_vm1, %v2171_v4  ;;  %vm1383_vm1 = vcmp.eq.s32.totalorder %v2854_v35, %v3109_v32  ;;  %v350_v35 = vld [vmem:[%s3565_s2 + $0x18] sm:$0xff] }
 0x1f4   : > { %2046 = vmatprep.subr.msk.mxu1 %vm1334_vm9, %v2171_v4  ;;  %vm1382_vm9 = vcmp.eq.s32.totalorder %v2851_v21, %v3184_v58 }
 0x1f5   : > { %2047 = vmatpush1.msk.msra.mxu1 %vm1333_vm13, %v2171_v4  ;;  %vm1379_vm13 = vcmp.eq.s32.totalorder %v2848_v48, %v3109_v32 }
 0x1f6   : > { %2048 = vmatprep.subr.msk.mxu1 %vm1396_vm2, %v2171_v4  ;;  %vm1378_vm2 = vcmp.eq.s32.totalorder %v2845_v61, %v3184_v58 }
 0x1f7   : > { %2049 = vmatpush2.msk.msra.mxu1 %vm1395_vm3, %v2171_v4  ;;  %vm1377_vm3 = vcmp.eq.s32.totalorder %v2845_v61, %v3109_v32  ;;  %v367_v61 = vld [vmem:[%s3565_s2 + $0xa0] sm:$0xff] }
 0x1f8   : > { %2050 = vmatprep.subr.msk.mxu1 %vm1394_vm10, %v2171_v4  ;;  %vm1376_vm10 = vcmp.eq.s32.totalorder %v2842_v2, %v3184_v58 }
 0x1f9   : > { %2051 = vmatpush2.msk.msra.mxu1 %vm1393_vm15, %v2171_v4  ;;  %vm1375_vm15 = vcmp.eq.s32.totalorder %v2842_v2, %v3109_v32  ;;  %v352_v2 = vld [vmem:[%s3565_s2 + $0x28] sm:$0xff] }
 0x1fa   : > { %2052 = vmatprep.subr.msk.mxu1 %vm1392_vm8, %v2171_v4  ;;  %vm1374_vm8 = vcmp.eq.s32.totalorder %v2839_v6, %v3184_v58 }
 0x1fb   : > { %2053 = vmatpush2.msk.msra.mxu1 %vm1391_vm4, %v2171_v4  ;;  %vm1373_vm4 = vcmp.eq.s32.totalorder %v2839_v6, %v3109_v32  ;;  %v351_v6 = vld [vmem:[%s3565_s2 + $0x20] sm:$0xff] }
 0x1fc   : > { %2054 = vmatprep.subr.msk.mxu1 %vm1390_vm7, %v2171_v4  ;;  %vm1372_vm7 = vcmp.eq.s32.totalorder %v2836_v15, %v3184_v58 }
 0x1fd   : > { %2055 = vmatpush2.msk.msra.mxu1 %vm1389_vm6, %v2171_v4  ;;  %vm1371_vm6 = vcmp.eq.s32.totalorder %v2836_v15, %v3109_v32  ;;  %v354_v15 = vld [vmem:[%s3565_s2 + $0x38] sm:$0xff] }
 0x1fe   : > { %2056 = vmatprep.subr.msk.mxu1 %vm1388_vm5, %v2171_v4  ;;  %vm1370_vm5 = vcmp.eq.s32.totalorder %v2833_v22, %v3184_v58 }
 0x1ff   : > { %2057 = vmatpush2.msk.msra.mxu1 %vm1387_vm0, %v2171_v4  ;;  %vm1369_vm0 = vcmp.eq.s32.totalorder %v2833_v22, %v3109_v32  ;;  %v353_v22 = vld [vmem:[%s3565_s2 + $0x30] sm:$0xff] }
 0x200   : > { %2058 = vmatprep.subr.msk.mxu1 %vm1386_vm14, %v2171_v4  ;;  %vm1381_vm14 = vcmp.eq.s32.totalorder %v2851_v21, %v3109_v32  ;;  %v349_v21 = vld [vmem:[%s3565_s2 + $0x10] sm:$0xff] }
 0x201   : > { %2059 = vmatpush2.msk.msra.mxu1 %vm1385_vm12, %v2171_v4  ;;  %vm1380_vm12 = vcmp.eq.s32.totalorder %v2848_v48, %v3184_v58  ;;  %v370_v48 = vld [vmem:[%s3565_s2 + $0xb8] sm:$0xff] }
 0x202   : > { %2060 = vmatprep.subr.msk.mxu1 %vm1384_vm11, %v2171_v4  ;;  %vm1368_vm11 = vcmp.eq.s32.totalorder %v2830_v40, %v3184_v58 }
 0x203   : > { %2061 = vmatpush2.msk.msra.mxu1 %vm1383_vm1, %v2171_v4  ;;  %vm1367_vm1 = vcmp.eq.s32.totalorder %v2830_v40, %v3109_v32  ;;  %v356_v40 = vld [vmem:[%s3565_s2 + $0x48] sm:$0xff] }
 0x204   : > { %2062 = vmatprep.subr.msk.mxu1 %vm1382_vm9, %v2171_v4  ;;  %vm1366_vm9 = vcmp.eq.s32.totalorder %v2827_v42, %v3184_v58 }
 0x205   : > { %2063 = vmatpush2.msk.msra.mxu1 %vm1381_vm14, %v2171_v4  ;;  %vm1365_vm14 = vcmp.eq.s32.totalorder %v2827_v42, %v3109_v32  ;;  %v355_v42 = vld [vmem:[%s3565_s2 + $0x40] sm:$0xff] }
 0x206   : > { %2064 = vmatprep.subr.msk.mxu1 %vm1380_vm12, %v2171_v4 }
 0x207   : > { %2065 = vmatpush2.msk.msra.mxu1 %vm1379_vm13, %v2171_v4 }
 0x208   : > { %2066 = vmatprep.subr.msk.mxu1 %vm1378_vm2, %v2171_v4 }
 0x209   : > { %2067 = vmatpush2.msk.msra.mxu1 %vm1377_vm3, %v2171_v4 }
 0x20a   : > { %2068 = vmatprep.subr.msk.mxu1 %vm1376_vm10, %v2171_v4 }
 0x20b   : > { %2069 = vmatpush2.msk.msra.mxu1 %vm1375_vm15, %v2171_v4 }
 0x20c   : > { %2070 = vmatprep.subr.msk.mxu1 %vm1374_vm8, %v2171_v4 }
 0x20d   : > { %2071 = vmatpush2.msk.msra.mxu1 %vm1373_vm4, %v2171_v4 }
 0x20e   : > { %2072 = vmatprep.subr.msk.mxu1 %vm1372_vm7, %v2171_v4 }
 0x20f   : > { %2073 = vmatpush2.msk.msra.mxu1 %vm1371_vm6, %v2171_v4 }
 0x210   : > { %2074 = vmatprep.subr.msk.mxu1 %vm1370_vm5, %v2171_v4 }
 0x211   : > { %2075 = vmatpush2.msk.msra.mxu1 %vm1369_vm0, %v2171_v4 }
 0x212   : > { %2076 = vmatprep.subr.msk.mxu1 %vm1368_vm11, %v2171_v4 }
 0x213   : > { %2077 = vmatpush2.msk.msra.mxu1 %vm1367_vm1, %v2171_v4 }
 0x214   : > { %2078 = vmatprep.subr.msk.mxu1 %vm1366_vm9, %v2171_v4 }
 0x215   : > { %2079 = vmatpush2.msk.msra.mxu1 %vm1365_vm14, %v2171_v4 }
 0x216   : > { %1590 = vmatmul.mubr.f32.vlgmr.msra.gmra.mxu1 %v347_v18 }
 0x217   : > { %1595 = vmatprep.mubr.f32.mxu1 %v350_v35  ;;  %v2120_v35 = vld [vmem:[%s2229_s25 + $0x30] sm:$0xff] }
 0x21a   : > { %1596 = vmatmul.mubr.f32.gmra.mxu1 %v349_v21 }
 0x21b   : > { %1601 = vmatprep.mubr.f32.mxu1 %v352_v2 }
 0x21e   : > { %1602 = vmatmul.mubr.f32.gmra.mxu1 %v351_v6  ;;  %v2121_v6 = vld [vmem:[%s2229_s25 + $0x48] sm:$0xff] }
 0x21f   : > { %1607 = vmatprep.mubr.f32.mxu1 %v354_v15 }
 0x222   : > { %1608 = vmatmul.mubr.f32.gmra.mxu1 %v353_v22 }
 0x223   : > { %1613 = vmatprep.mubr.f32.mxu1 %v356_v40 }
 0x226   : > { %1614 = vmatmul.mubr.f32.gmra.mxu1 %v355_v42 }
 0x227   : > { %1619 = vmatprep.mubr.f32.mxu1 %v358_v51 }
 0x22a   : > { %1620 = vmatmul.mubr.f32.gmra.mxu1 %v357_v20 }
 0x22b   : > { %1625 = vmatprep.mubr.f32.mxu1 %v360_v29  ;;  %v2122_v29 = vld [vmem:[%s2229_s25 + $0x40] sm:$0xff] }
 0x22e   : > { %1626 = vmatmul.mubr.f32.gmra.mxu1 %v359_v28 }
 0x22f   : > { %1631 = vmatprep.mubr.f32.mxu1 %v362_v38  ;;  %v2123_v38 = vld [vmem:[%s2229_s25 + $0x58] sm:$0xff] }
 0x232   : > { %1632 = vmatmul.mubr.f32.gmra.mxu1 %v361_v50 }
 0x233   : > { %1637 = vmatprep.mubr.f32.mxu1 %v364_v8 }
 0x236   : > { %1638 = vmatmul.mubr.f32.gmra.mxu1 %v363_v5 }
 0x237   : > { %1643 = vmatprep.mubr.f32.mxu1 %v366_v14 }
 0x23a   : > { %1644 = vmatmul.mubr.f32.gmra.mxu1 %v365_v59 }
 0x23b   : > { %1649 = vmatprep.mubr.f32.mxu1 %v368_v27 }
 0x23e   : > { %1650 = vmatmul.mubr.f32.gmra.mxu1 %v367_v61  ;;  %v2124_v61 = vld [vmem:[%s2229_s25 + $0x50] sm:$0xff] }
 0x23f   : > { %1655 = vmatprep.mubr.f32.mxu1 %v370_v48 }
 0x242   : > { %1656 = vmatmul.mubr.f32.gmra.mxu1 %v369_v62  ;;  %v2125_v62 = vld [vmem:[%s2229_s25 + $0x68] sm:$0xff] }
 0x243   : > { %1661 = vmatprep.mubr.f32.mxu1 %v372_v23 }
 0x246   : > { %1662 = vmatmul.mubr.f32.gmra.mxu1 %v371_v53 }
 0x247   : > { %1667 = vmatprep.mubr.f32.mxu1 %v374_v25 }
 0x24a   : > { %1668 = vmatmul.mubr.f32.gmra.mxu1 %v373_v45 }
 0x24b   : > { %1673 = vmatprep.mubr.f32.mxu1 %v376_v34 }
 0x24e   : > { %1674 = vmatmul.mubr.f32.gmra.mxu1 %v375_v1 }
 0x24f   : > { %1679 = vmatprep.mubr.f32.mxu1 %v378_v26  ;;  %v2126_v26 = vld [vmem:[%s2229_s25 + $0x60] sm:$0xff] }
 0x252   : > { %1680 = vmatmul.mubr.f32.gmra.mxu1 %v377_v47 }
 0x2d6   : > { %v1591_v37 = vpop.f32.mrf.mxu1 }
 0x2d7   : > { %1686 = vst [vmem:[%s3484_s30] sm:$0xff] %v1591_v37  ;;  %v1718_v60 = vsub.f32 %v2117_v13, %v1591_v37  ;;  %v2127_v37 = vld [vmem:[%s2229_s25 + $0x78] sm:$0xff] }
 0x2d8   : > { %v1593_v32 = vpop.f32.mrf.mxu1 }
 0x2d9   : > { %1687 = vst [vmem:[%s3484_s30 + $0x8] sm:$0xff] %v1593_v32  ;;  %v1719_v33 = vsub.f32 %v2114_v24, %v1593_v32  ;;  %v1750_v22 = vmul.f32 %v1718_v60, %v1718_v60  ;;  %v2130_v24 = vld [vmem:[%s2229_s25 + $0x80] sm:$0xff] }
 0x2da   : > { %v1597_v10 = vpop.f32.mrf.mxu1 }
 0x2db   : > { %1688 = vst [vmem:[%s3484_s30 + $0x10] sm:$0xff] %v1597_v10  ;;  %v1720_v63 = vsub.f32 %v2115_v3, %v1597_v10  ;;  %v1751_v58 = vmul.f32 %v1719_v33, %v1719_v33  ;;  %v2131_v3 = vld [vmem:[%s2229_s25 + $0x98] sm:$0xff] }
 0x2dc   : > { %v1599_v19 = vpop.f32.mrf.mxu1 }
 0x2dd   : > { %1689 = vst [vmem:[%s3484_s30 + $0x18] sm:$0xff] %v1599_v19  ;;  %v1721_v17 = vsub.f32 %v2113_v30, %v1599_v19  ;;  %v1752_v4 = vmul.f32 %v1720_v63, %v1720_v63  ;;  %v1782_v8 = vadd.f32 %v1751_v58, %v1750_v22 }
 0x2de   : > { %v1603_v52 = vpop.f32.mrf.mxu1 }
 0x2df   : > { %1690 = vst [vmem:[%s3484_s30 + $0x20] sm:$0xff] %v1603_v52  ;;  %v1753_v44 = vmul.f32 %v1721_v17, %v1721_v17  ;;  %v1722_v41 = vsub.f32 %v2118_v57, %v1603_v52 }
 0x2e0   : > { %v1605_v9 = vpop.f32.mrf.mxu1 }
 0x2e1   : > { %1691 = vst [vmem:[%s3484_s30 + $0x28] sm:$0xff] %v1605_v9  ;;  %v1723_v11 = vsub.f32 %v2116_v39, %v1605_v9  ;;  %v1783_v40 = vadd.f32 %v1753_v44, %v1752_v4  ;;  %v1754_v42 = vmul.f32 %v1722_v41, %v1722_v41  ;;  %v2132_v44 = vld [vmem:[%s2229_s25 + $0x90] sm:$0xff]  ;;  %v2133_v41 = vld [vmem:[%s2229_s25 + $0xa8] sm:$0xff] }
 0x2e2   : > { %v1609_v31 = vpop.f32.mrf.mxu1 }
 0x2e3   : > { %1692 = vst [vmem:[%s3484_s30 + $0x30] sm:$0xff] %v1609_v31  ;;  %v1755_v18 = vmul.f32 %v1723_v11, %v1723_v11  ;;  %v1724_v21 = vsub.f32 %v2120_v35, %v1609_v31  ;;  %v1798_v53 = vadd.f32 %v1783_v40, %v1782_v8  ;;  %v2134_v35 = vld [vmem:[%s2229_s25 + $0xa0] sm:$0xff] }
 0x2e4   : > { %v1611_v43 = vpop.f32.mrf.mxu1 }
 0x2e5   : > { %1693 = vst [vmem:[%s3484_s30 + $0x38] sm:$0xff] %v1611_v43  ;;  %v1725_v46 = vsub.f32 %v2119_v0, %v1611_v43  ;;  %v1784_v5 = vadd.f32 %v1755_v18, %v1754_v42  ;;  %v1756_v14 = vmul.f32 %v1724_v21, %v1724_v21  ;;  %v2128_v43 = vld [vmem:[%s2229_s25 + $0x70] sm:$0xff] }
 0x2e6   : > { %v1615_v55 = vpop.f32.mrf.mxu1 }
 0x2e7   : > { %1694 = vst [vmem:[%s3484_s30 + $0x40] sm:$0xff] %v1615_v55  ;;  %v1757_v51 = vmul.f32 %v1725_v46, %v1725_v46  ;;  %v1726_v28 = vsub.f32 %v2122_v29, %v1615_v55  ;;  %v1799_v10 = vadd.f32 %v1798_v53, %v1784_v5 }
 0x2e8   : > { %v1617_v36 = vpop.f32.mrf.mxu1 }
 0x2e9   : > { %1695 = vst [vmem:[%s3484_s30 + $0x48] sm:$0xff] %v1617_v36  ;;  %v1727_v15 = vsub.f32 %v2121_v6, %v1617_v36  ;;  %v1785_v25 = vadd.f32 %v1757_v51, %v1756_v14  ;;  %v1758_v34 = vmul.f32 %v1726_v28, %v1726_v28  ;;  %v2129_v36 = vld [vmem:[%s2229_s25 + $0x88] sm:$0xff] }
 0x2ea   : > { %v1621_v7 = vpop.f32.mrf.mxu1 }
 0x2eb   : > { %1696 = vst [vmem:[%s3484_s30 + $0x50] sm:$0xff] %v1621_v7  ;;  %v1759_v27 = vmul.f32 %v1727_v15, %v1727_v15  ;;  %v1728_v48 = vsub.f32 %v2124_v61, %v1621_v7  ;;  %v2138_v61 = vld [vmem:[%s2229_s25 + $0xc0] sm:$0xff] }
 0x2ec   : > { %v1623_v54 = vpop.f32.mrf.mxu1 }
 0x2ed   : > { %1697 = vst [vmem:[%s3484_s30 + $0x58] sm:$0xff] %v1623_v54  ;;  %v1729_v50 = vsub.f32 %v2123_v38, %v1623_v54  ;;  %v1786_v52 = vadd.f32 %v1759_v27, %v1758_v34  ;;  %v1760_v9 = vmul.f32 %v1728_v48, %v1728_v48  ;;  %v2137_v38 = vld [vmem:[%s2229_s25 + $0xc8] sm:$0xff]  ;;  %v2139_v34 = vld [vmem:[%s2229_s25 + $0xd0] sm:$0xff] }
 0x2ee   : > { %v1627_v16 = vpop.f32.mrf.mxu1 }
 0x2ef   : > { %1698 = vst [vmem:[%s3484_s30 + $0x60] sm:$0xff] %v1627_v16  ;;  %v1761_v1 = vmul.f32 %v1729_v50, %v1729_v50  ;;  %v1730_v47 = vsub.f32 %v2126_v26, %v1627_v16  ;;  %v1800_v16 = vadd.f32 %v1799_v10, %v1785_v25  ;;  %v2140_v26 = vld [vmem:[%s2229_s25 + $0xd8] sm:$0xff] }
 0x2f0   : > { %v1629_v12 = vpop.f32.mrf.mxu1 }
 0x2f1   : > { %1699 = vst [vmem:[%s3484_s30 + $0x68] sm:$0xff] %v1629_v12  ;;  %v1731_v23 = vsub.f32 %v2125_v62, %v1629_v12  ;;  %v1787_v30 = vadd.f32 %v1761_v1, %v1760_v9  ;;  %v1762_v17 = vmul.f32 %v1730_v47, %v1730_v47  ;;  %v1801_v11 = vadd.f32 %v1800_v16, %v1786_v52  ;;  %v2141_v9 = vld [vmem:[%s2229_s25 + $0xe0] sm:$0xff] }
 0x2f2   : > { %v1633_v49 = vpop.f32.mrf.mxu1 }
 0x2f3   : > { %1700 = vst [vmem:[%s3484_s30 + $0x70] sm:$0xff] %v1633_v49  ;;  %v1763_v31 = vmul.f32 %v1731_v23, %v1731_v23  ;;  %v1732_v55 = vsub.f32 %v2128_v43, %v1633_v49 }
 0x2f4   : > { %v1635_v56 = vpop.f32.mrf.mxu1 }
 0x2f5   : > { %1701 = vst [vmem:[%s3484_s30 + $0x78] sm:$0xff] %v1635_v56  ;;  %v1733_v32 = vsub.f32 %v2127_v37, %v1635_v56  ;;  %v1788_v49 = vadd.f32 %v1763_v31, %v1762_v17  ;;  %v1764_v13 = vmul.f32 %v1732_v55, %v1732_v55  ;;  %v1802_v56 = vadd.f32 %v1801_v11, %v1787_v30 }
 0x2f6   : > { %v1639_v2 = vpop.f32.mrf.mxu1 }
 0x2f7   : > { %1702 = vst [vmem:[%s3484_s30 + $0x80] sm:$0xff] %v1639_v2  ;;  %v1765_v12 = vmul.f32 %v1733_v32, %v1733_v32  ;;  %v1734_v33 = vsub.f32 %v2130_v24, %v1639_v2  ;;  %v2135_v2 = vld [vmem:[%s2229_s25 + $0xb8] sm:$0xff]  ;;  %v1803_v22 = vadd.f32 %v1802_v56, %v1788_v49 }
 0x2f8   : > { %v1641_v20 = vpop.f32.mrf.mxu1 }
 0x2f9   : > { %1703 = vst [vmem:[%s3484_s30 + $0x88] sm:$0xff] %v1641_v20  ;;  %v1735_v7 = vsub.f32 %v2129_v36, %v1641_v20  ;;  %v1789_v58 = vadd.f32 %v1765_v12, %v1764_v13  ;;  %v1766_v4 = vmul.f32 %v1734_v33, %v1734_v33  ;;  %v2136_v20 = vld [vmem:[%s2229_s25 + $0xb0] sm:$0xff]  ;;  %v2144_v13 = vld [vmem:[%s2229_s25 + $0xf8] sm:$0xff] }
 0x2fa   : > { %v1645_v59 = vpop.f32.mrf.mxu1 }
 0x2fb   : > { %1704 = vst [vmem:[%s3484_s30 + $0x90] sm:$0xff] %v1645_v59  ;;  %v1767_v60 = vmul.f32 %v1735_v7, %v1735_v7  ;;  %v1736_v57 = vsub.f32 %v2132_v44, %v1645_v59  ;;  %v1804_v8 = vadd.f32 %v1803_v22, %v1789_v58 }
 0x2fc   : > { %v1647_v45 = vpop.f32.mrf.mxu1 }
 0x2fd   : > { %1705 = vst [vmem:[%s3484_s30 + $0x98] sm:$0xff] %v1647_v45  ;;  %v1737_v63 = vsub.f32 %v2131_v3, %v1647_v45  ;;  %v1790_v40 = vadd.f32 %v1767_v60, %v1766_v4  ;;  %v1768_v42 = vmul.f32 %v1736_v57, %v1736_v57  ;;  %v2143_v3 = vld [vmem:[%s2229_s25 + $0xf0] sm:$0xff] }
 0x2fe   : > { %v1651_v19 = vpop.f32.mrf.mxu1 }
 0x2ff   : > { %1706 = vst [vmem:[%s3484_s30 + $0xa0] sm:$0xff] %v1651_v19  ;;  %v1769_v18 = vmul.f32 %v1737_v63, %v1737_v63  ;;  %v1738_v21 = vsub.f32 %v2134_v35, %v1651_v19  ;;  %v1805_v62 = vadd.f32 %v1804_v8, %v1790_v40 }
 0x300   : > { %v1653_v54 = vpop.f32.mrf.mxu1 }
 0x301   : > { %1707 = vst [vmem:[%s3484_s30 + $0xa8] sm:$0xff] %v1653_v54  ;;  %v1739_v0 = vsub.f32 %v2133_v41, %v1653_v54  ;;  %v1791_v5 = vadd.f32 %v1769_v18, %v1768_v42  ;;  %v1770_v14 = vmul.f32 %v1738_v21, %v1738_v21  ;;  %v2142_v54 = vld [vmem:[%s2229_s25 + $0xe8] sm:$0xff] }
 0x302   : > { %v1657_v39 = vpop.f32.mrf.mxu1 }
 0x303   : > { %1708 = vst [vmem:[%s3484_s30 + $0xb0] sm:$0xff] %v1657_v39  ;;  %v1771_v51 = vmul.f32 %v1739_v0, %v1739_v0  ;;  %v1740_v29 = vsub.f32 %v2136_v20, %v1657_v39  ;;  %v1806_v37 = vadd.f32 %v1805_v62, %v1791_v5 }
 0x304   : > { %v1659_v46 = vpop.f32.mrf.mxu1 }
 0x305   : > { %1709 = vst [vmem:[%s3484_s30 + $0xb8] sm:$0xff] %v1659_v46  ;;  %v1741_v6 = vsub.f32 %v2135_v2, %v1659_v46  ;;  %v1792_v23 = vadd.f32 %v1771_v51, %v1770_v14  ;;  %v1772_v53 = vmul.f32 %v1740_v29, %v1740_v29 }
 0x306   : > { %v1663_v15 = vpop.f32.mrf.mxu1 }
 0x307   : > { %1710 = vst [vmem:[%s3484_s30 + $0xc0] sm:$0xff] %v1663_v15  ;;  %v1773_v59 = vmul.f32 %v1741_v6, %v1741_v6  ;;  %v1742_v48 = vsub.f32 %v2138_v61, %v1663_v15  ;;  %v1807_v43 = vadd.f32 %v1806_v37, %v1792_v23 }
 0x308   : > { %v1665_v28 = vpop.f32.mrf.mxu1 }
 0x309   : > { %1711 = vst [vmem:[%s3484_s30 + $0xc8] sm:$0xff] %v1665_v28  ;;  %v1743_v50 = vsub.f32 %v2137_v38, %v1665_v28  ;;  %v1793_v32 = vadd.f32 %v1773_v59, %v1772_v53  ;;  %v1774_v19 = vmul.f32 %v1742_v48, %v1742_v48 }
 0x30a   : > { %v1669_v27 = vpop.f32.mrf.mxu1 }
 0x30b   : > { %1712 = vst [vmem:[%s3484_s30 + $0xd0] sm:$0xff] %v1669_v27  ;;  %v1775_v45 = vmul.f32 %v1743_v50, %v1743_v50  ;;  %v1744_v1 = vsub.f32 %v2139_v34, %v1669_v27  ;;  %v1808_v30 = vadd.f32 %v1807_v43, %v1793_v32 }
 0x30c   : > { %v1671_v25 = vpop.f32.mrf.mxu1 }
 0x30d   : > { %1713 = vst [vmem:[%s3484_s30 + $0xd8] sm:$0xff] %v1671_v25  ;;  %v1745_v47 = vsub.f32 %v2140_v26, %v1671_v25  ;;  %v1794_v36 = vadd.f32 %v1775_v45, %v1774_v19  ;;  %v1776_v7 = vmul.f32 %v1744_v1, %v1744_v1 }
 0x30e   : > { %v1675_v10 = vpop.f32.mrf.mxu1 }
 0x30f   : > { %v1777_v52 = vmul.f32 %v1745_v47, %v1745_v47  ;;  %1714 = vst [vmem:[%s3484_s30 + $0xe0] sm:$0xff] %v1675_v10  ;;  %v1746_v31 = vsub.f32 %v2141_v9, %v1675_v10  ;;  %v1809_v11 = vadd.f32 %v1808_v30, %v1794_v36 }
 0x310   : > { %v1677_v55 = vpop.f32.mrf.mxu1 }
 0x311   : > { %1715 = vst [vmem:[%s3484_s30 + $0xe8] sm:$0xff] %v1677_v55  ;;  %v1747_v16 = vsub.f32 %v2142_v54, %v1677_v55  ;;  %v1795_v12 = vadd.f32 %v1777_v52, %v1776_v7  ;;  %v1778_v24 = vmul.f32 %v1746_v31, %v1746_v31 }
 0x312   : > { %v1681_v17 = vpop.f32.mrf.mxu1 }
 0x313   : > { %v1779_v33 = vmul.f32 %v1747_v16, %v1747_v16  ;;  %1716 = vst [vmem:[%s3484_s30 + $0xf0] sm:$0xff] %v1681_v17  ;;  %v1748_v63 = vsub.f32 %v2143_v3, %v1681_v17  ;;  %v1810_v44 = vadd.f32 %v1809_v11, %v1795_v12 }
 0x314   : > { %v1683_v39 = vpop.f32.mrf.mxu1 }
 0x315   : > { %v1796_v49 = vadd.f32 %v1779_v33, %v1778_v24  ;;  %1717 = vst [vmem:[%s3484_s30 + $0xf8] sm:$0xff] %v1683_v39  ;;  %v1749_v60 = vsub.f32 %v2144_v13, %v1683_v39  ;;  %v1780_v57 = vmul.f32 %v1748_v63, %v1748_v63 }
 0x317   : > { %v1781_v41 = vmul.f32 %v1749_v60, %v1749_v60  ;;  %v1811_v0 = vadd.f32 %v1810_v44, %v1796_v49 }
 0x319   : > { %v1797_v46 = vadd.f32 %v1781_v41, %v1780_v57 }
 0x31b   : > { %v1812_v56 = vadd.f32 %v1811_v0, %v1797_v46 }
 0x31d   : > { %1813 = vst [vmem:[%s282_s8] sm:$0xff] %v1812_v56 }
 0x31e PF: > { %s16_s20 = sadd.s32 1, %s2167_s20   ;;  %s3758_s18 = smov %s2163_s19 }
 0x31f   : > { %p13_p5 = scmp.ge.s32.totalorder %s16_s20, 4   ;;  %s3759_s19 = smov %s3761_s21 }
 0x321   :  { %15 = sbr.rel (!%p13_p5) target bundleno = 2 (0x2), region = 78 }

</bundles_post_ra>
